<compile_context>
chip_gen: v7x
topology: tpu7x:2x2x1
jax: 0.10.0
libtpu: 0.0.40
codegen_flags: <defaults>
</compile_context>

<pallas_src>
import functools

import jax
import jax.numpy as jnp
import numpy as np
from jax.experimental import pallas as pl
from jax.experimental.pallas import tpu as pltpu


LANE = 128          # last dims padded to a multiple of this
SUBLANE = 16        # bf16 sublane packing; batch tiles are multiples of this
MAX_TILE_B = 2048   # hard cap on the batch tile (still < 3 MiB of tile data)


def _round_up(x, m):
    return (x + m - 1) // m * m


def _cdiv(a, b):
    return -(-a // b)


def _vmem_budget_and_limit():
    """Generation-aware VMEM sizing.

    ~75% of physical VMEM as the tile-picker budget and ~87.5% as the scoped
    Mosaic limit: 96 / 112 MiB on 128-MiB parts (v5e/v6e), 48 / 56 MiB on
    64-MiB v7x.  Falls back to v7x-safe numbers if the query is unavailable.
    """
    try:
        cap = int(pltpu.get_tpu_info().vmem_capacity_bytes)
    except Exception:
        cap = 64 * 1024 * 1024
    return (cap * 3) // 4, (cap * 7) // 8


# ----------------------------- Pallas kernel ------------------------------ #

def _mlp_kernel(num_layers, *refs):
    """refs = (x_ref, w0, b0, ..., w_{L-1}, b_{L-1}, out_ref).

    x is a (TILE_B, K0p) bf16 tile; weights are bf16 (K_pad, N_pad) and stay
    resident (single-buffered) in VMEM across grid steps; biases are f32 (1, N).
    """
    x_ref = refs[0]
    out_ref = refs[-1]
    h = x_ref[...]                                      # bf16
    for l in range(num_layers):
        w = refs[1 + 2 * l][...]                        # bf16 MXU operand
        b = refs[2 + 2 * l][...]                        # f32 (1, N) -> broadcasts
        acc = jnp.dot(h, w, preferred_element_type=jnp.float32) + b
        if l < num_layers - 1:
            # ReLU kept in f32 so the same kernel is exact on v5e (no bf16 VPU).
            # (bf16 clamp on v6e/v7x would be equivalent but the kernel is
            #  DMA/overhead-bound, so this is not on the critical path.)
            h = jnp.maximum(acc, 0.0).astype(jnp.bfloat16)
        else:
            out_ref[...] = acc.astype(out_ref.dtype)    # bf16 writeback


# ----------------------------- tiling helpers ------------------------------ #

def _pick_tile_b(batch, in_dim_p, out_dim_p, widest_p, weight_bytes, budget):
    """Batch tile (multiple of 16, <= MAX_TILE_B) that fits VMEM, gives >=2 grid
    steps when the batch permits (v7x has 2 TensorCores) and minimizes padding."""
    per_row = (2 * 2 * in_dim_p        # double-buffered bf16 input tile
               + 2 * 2 * out_dim_p     # double-buffered bf16 output tile
               + 2 * 4 * widest_p)     # f32 intermediates inside the kernel
    # Weights/biases are single-buffered (pl.Buffered(1)) -> charge them once.
    avail = max(budget - weight_bytes, SUBLANE * per_row)
    cap = min(MAX_TILE_B, max(SUBLANE, (avail // per_row) // SUBLANE * SUBLANE))
    min_steps = 2 if batch >= 2 * SUBLANE else 1
    steps = max(_cdiv(batch, cap), min_steps)
    return max(SUBLANE, _round_up(_cdiv(batch, steps), SUBLANE))


# ------------------------------- fused MLP --------------------------------- #

def mlp_forward(x, weights, biases, out_dim, *, tile_b=None):
    """Fused MLP on padded operands.

    x:        (B, K0p) bf16, K0p a multiple of 128.
    weights:  list of bf16 (K_pad, N_pad) arrays (pre-transposed, zero-padded).
    biases:   list of f32 (1, N_pad) arrays.
    out_dim:  true (unpadded) output width; result sliced to it and cast to f32.
    """
    num_layers = len(weights)
    batch, in_dim_p = x.shape
    out_dim_p = weights[-1].shape[1]
    widest_p = max([in_dim_p] + [w.shape[1] for w in weights])
    weight_bytes = (sum(w.size * w.dtype.itemsize for w in weights)
                    + sum(b.size * b.dtype.itemsize for b in biases))
    budget, vmem_limit = _vmem_budget_and_limit()

    if tile_b is None:
        tile_b = _pick_tile_b(batch, in_dim_p, out_dim_p, widest_p,
                              weight_bytes, budget)
    tile_b = _round_up(tile_b, SUBLANE)

    b_pad = _round_up(batch, tile_b)
    if b_pad != batch:
        x = jnp.pad(x, ((0, b_pad - batch), (0, 0)))
    num_tiles = b_pad // tile_b

    args = [x]
    for w, b in zip(weights, biases):
        args += [w, b]

    def build_in_specs(single_buffer_weights):
        # Streamed input tile.  (If profiling ever shows exposed input DMA at
        # small tile_b, bump this spec to pipeline_mode=pl.Buffered(3).)
        specs = [pl.BlockSpec((tile_b, in_dim_p), lambda i: (i, 0))]
        for w, b in zip(weights, biases):
            for arr in (w, b):
                if single_buffer_weights:
                    specs.append(pl.BlockSpec(arr.shape, lambda i: (0, 0),
                                              pipeline_mode=pl.Buffered(1)))
                else:
                    specs.append(pl.BlockSpec(arr.shape, lambda i: (0, 0)))
        return specs

    flops = 2 * b_pad * sum(w.shape[0] * w.shape[1] for w in weights)
    bytes_accessed = x.size * 2 + weight_bytes + b_pad * out_dim_p * 2

    kernel = functools.partial(_mlp_kernel, num_layers)
    call = functools.partial(
        pl.pallas_call,
        kernel,
        out_shape=jax.ShapeDtypeStruct((b_pad, out_dim_p), jnp.bfloat16),
        grid=(num_tiles,),
        out_specs=pl.BlockSpec((tile_b, out_dim_p), lambda i: (i, 0)),
        compiler_params=pltpu.CompilerParams(
            dimension_semantics=("parallel",),      # v7x: shard batch over 2 TCs
            vmem_limit_bytes=int(vmem_limit),
        ),
        cost_estimate=pl.CostEstimate(
            flops=flops, transcendentals=0, bytes_accessed=bytes_accessed),
    )

    single_buffer = hasattr(pl, "Buffered")
    try:
        out = call(in_specs=build_in_specs(single_buffer))(*args)
    except Exception:
        # Fallback for stacks without BlockSpec.pipeline_mode support:
        # default double-buffered resident weights (correct, more VMEM).
        out = call(in_specs=build_in_specs(False))(*args)

    # Slice + f32 cast outside the kernel (tiny (B, out_dim) array).
    return out[:batch, :out_dim].astype(jnp.float32)


# ----------------------------- Generator module ---------------------------- #

class Generator:
    """JAX/Pallas port of byol_explore.networks.byol_hindsight_nets.Generator.

    create_mlp(in_dim, num_hidden, num_units, out_dim, dropout_prob=0.2) is
    num_hidden x [Linear -> ReLU -> Dropout(0.2)] followed by a final
    Linear(num_units, latent_dim).
    """
    # TODO(synk): training-mode dropout (p=0.2) would need pltpu.prng_* masks in
    # the kernel; eval-mode identity is used here (matches module.eval()).
    # Precision contract: weights/activations are bf16 with f32 MXU
    # accumulation; results match a PyTorch f32 forward only to ~bf16 accuracy.

    def __init__(self, obs_dim, action_dim, latent_dim, num_hidden, num_units,
                 noise_dim=256, key=None):
        self.obs_dim = obs_dim
        self.action_dim = action_dim
        self.latent_dim = latent_dim
        self.noise_dim = noise_dim

        in_dim = 2 * obs_dim + action_dim + noise_dim
        self.in_dim = in_dim
        self.in_dim_p = _round_up(in_dim, LANE)
        dims = [in_dim] + [num_units] * num_hidden + [latent_dim]
        dims_p = [self.in_dim_p] + [_round_up(d, LANE) for d in dims[1:]]

        if key is None:
            key = jax.random.PRNGKey(42)
        self.weights = []   # bf16, pre-transposed (in,out), zero-padded to 128s
        self.biases = []    # f32, zero-padded (1, out_pad)
        for (fi, fo), (fip, fop) in zip(zip(dims[:-1], dims[1:]),
                                        zip(dims_p[:-1], dims_p[1:])):
            key, wk, bk = jax.random.split(key, 3)
            bound = 1.0 / float(np.sqrt(fi))          # nn.Linear default scale
            w = jax.random.uniform(wk, (fi, fo), jnp.float32, -bound, bound)
            b = jax.random.uniform(bk, (fo,), jnp.float32, -bound, bound)
            w_p = jnp.zeros((fip, fop), jnp.bfloat16).at[:fi, :fo].set(
                w.astype(jnp.bfloat16))
            b_p = jnp.zeros((1, fop), jnp.float32).at[0, :fo].set(b)
            self.weights.append(w_p)
            self.biases.append(b_p)

    def __call__(self, obs, action, obs_next, noise_key, *, tile_b=None):
        batch = obs.shape[0]
        bf16 = jnp.bfloat16
        action_one_hot = jax.nn.one_hot(action, self.action_dim, dtype=bf16)
        # torch.randn equivalent (deterministic via explicit key), generated
        # directly in bf16 -- the noise block dominates the input lanes.
        noise = jax.random.normal(noise_key, (batch, self.noise_dim), bf16)
        pad = jnp.zeros((batch, self.in_dim_p - self.in_dim), bf16)
        # Single bf16 concat, already lane-padded: one (B, K0p) bf16 slab.
        x = jnp.concatenate(
            (obs.astype(bf16), action_one_hot, obs_next.astype(bf16),
             noise, pad), axis=1)
        return mlp_forward(x, self.weights, self.biases, self.latent_dim,
                           tile_b=tile_b)


# -------------------------- pure-JAX reference ------------------------------ #

def _mlp_reference(x_bf16, weights, biases, out_dim):
    h = x_bf16.astype(jnp.float32)
    for l, (w, b) in enumerate(zip(weights, biases)):
        h = h @ w.astype(jnp.float32) + b
        if l < len(weights) - 1:
            h = jnp.maximum(h, 0.0).astype(jnp.bfloat16).astype(jnp.float32)
        else:
            h = h.astype(jnp.bfloat16).astype(jnp.float32)   # mirror bf16 output
    return h[:, :out_dim]


# --------------------------------- main ------------------------------------ #

if __name__ == "__main__":
    obs_dim, action_dim, latent_dim = 16, 4, 8
    num_hidden, num_units = 2, 32
    batch = 64

    root = jax.random.PRNGKey(0)
    k_obs, k_obs_next, k_act, k_noise, k_params = jax.random.split(root, 5)

    obs = jax.random.normal(k_obs, (batch, obs_dim), jnp.float32)
    obs_next = jax.random.normal(k_obs_next, (batch, obs_dim), jnp.float32)
    action = jax.random.randint(k_act, (batch,), 0, action_dim, jnp.int32)

    gen = Generator(obs_dim, action_dim, latent_dim, num_hidden, num_units,
                    key=k_params)

    # Auto tile picker: batch=64 -> 2 grid steps of 32 rows (>=2 steps keeps
    # both v7x TensorCores busy and exercises the pipelined batch grid).
    out = gen(obs, action, obs_next, k_noise)
    out = jax.block_until_ready(out)
    assert out.shape == (batch, latent_dim), out.shape
    assert out.dtype == jnp.float32, out.dtype

    # Numerical check against a pure-JAX reference on the same bf16 operands.
    bf16 = jnp.bfloat16
    aoh = jax.nn.one_hot(action, action_dim, dtype=bf16)
    noise = jax.random.normal(k_noise, (batch, gen.noise_dim), bf16)
    pad = jnp.zeros((batch, gen.in_dim_p - gen.in_dim), bf16)
    x_ref = jnp.concatenate((obs.astype(bf16), aoh, obs_next.astype(bf16),
                             noise, pad), axis=1)
    ref = _mlp_reference(x_ref, gen.weights, gen.biases, latent_dim)
    np.testing.assert_allclose(np.asarray(out), np.asarray(ref),
                               rtol=2e-2, atol=2e-2)

    print("KERNEL_OK")
</pallas_src>

<mosaic_0001>
module attributes {stable_mosaic.version = 11 : i64} {
  func.func @_mlp_kernel(%arg0: i32, %arg1: memref<32x384xbf16, #tpu.memory_space<vmem>>, %arg2: memref<384x128xbf16, #tpu.memory_space<vmem>>, %arg3: memref<1x128xf32, #tpu.memory_space<vmem>>, %arg4: memref<128x128xbf16, #tpu.memory_space<vmem>>, %arg5: memref<1x128xf32, #tpu.memory_space<vmem>>, %arg6: memref<128x128xbf16, #tpu.memory_space<vmem>>, %arg7: memref<1x128xf32, #tpu.memory_space<vmem>>, %arg8: memref<32x128xbf16, #tpu.memory_space<vmem>>) attributes {dimension_semantics = [#tpu.dimension_semantics<parallel>], iteration_bounds = array<i64: 2>, scalar_prefetch = 0 : i64, scratch_operands = 0 : i64, tpu.core_type = #tpu.core_type<tc>, window_params = [{transform_indices = @transform_0, window_bounds = array<i64: 32, 384>}, {pipeline_mode = #tpu.pipeline_mode<synchronous>, transform_indices = @transform_1, window_bounds = array<i64: 384, 128>}, {pipeline_mode = #tpu.pipeline_mode<synchronous>, transform_indices = @transform_2, window_bounds = array<i64: 1, 128>}, {pipeline_mode = #tpu.pipeline_mode<synchronous>, transform_indices = @transform_3, window_bounds = array<i64: 128, 128>}, {pipeline_mode = #tpu.pipeline_mode<synchronous>, transform_indices = @transform_4, window_bounds = array<i64: 1, 128>}, {pipeline_mode = #tpu.pipeline_mode<synchronous>, transform_indices = @transform_5, window_bounds = array<i64: 128, 128>}, {pipeline_mode = #tpu.pipeline_mode<synchronous>, transform_indices = @transform_6, window_bounds = array<i64: 1, 128>}, {transform_indices = @transform_7, window_bounds = array<i64: 32, 128>}]} {
    %c0 = arith.constant 0 : index
    %c0_0 = arith.constant 0 : index
    %0 = vector.load %arg1[%c0, %c0_0] : memref<32x384xbf16, #tpu.memory_space<vmem>>, vector<32x384xbf16>
    %c0_1 = arith.constant 0 : index
    %c0_2 = arith.constant 0 : index
    %1 = vector.load %arg2[%c0_1, %c0_2] : memref<384x128xbf16, #tpu.memory_space<vmem>>, vector<384x128xbf16>
    %c0_3 = arith.constant 0 : index
    %c0_4 = arith.constant 0 : index
    %2 = vector.load %arg3[%c0_3, %c0_4] : memref<1x128xf32, #tpu.memory_space<vmem>>, vector<1x128xf32>
    %cst = arith.constant dense<0.000000e+00> : vector<32x128xf32>
    %3 = tpu.matmul %0, %1, %cst {dimension_numbers = #tpu.dot_dimension_numbers<[1], [0], [0], [1], [0, 0, 1, 1], [], []>} : vector<32x384xbf16>, vector<384x128xbf16>, vector<32x128xf32> -> vector<32x128xf32>
    %4 = vector.broadcast %2 : vector<1x128xf32> to vector<32x128xf32>
    %5 = arith.addf %3, %4 : vector<32x128xf32>
    %cst_5 = arith.constant 0.000000e+00 : f32
    %6 = vector.broadcast %cst_5 : f32 to vector<32x128xf32>
    %7 = arith.maximumf %5, %6 : vector<32x128xf32>
    %8 = arith.truncf %7 : vector<32x128xf32> to vector<32x128xbf16>
    %c0_6 = arith.constant 0 : index
    %c0_7 = arith.constant 0 : index
    %9 = vector.load %arg4[%c0_6, %c0_7] : memref<128x128xbf16, #tpu.memory_space<vmem>>, vector<128x128xbf16>
    %c0_8 = arith.constant 0 : index
    %c0_9 = arith.constant 0 : index
    %10 = vector.load %arg5[%c0_8, %c0_9] : memref<1x128xf32, #tpu.memory_space<vmem>>, vector<1x128xf32>
    %cst_10 = arith.constant dense<0.000000e+00> : vector<32x128xf32>
    %11 = tpu.matmul %8, %9, %cst_10 {dimension_numbers = #tpu.dot_dimension_numbers<[1], [0], [0], [1], [0, 0, 1, 1], [], []>} : vector<32x128xbf16>, vector<128x128xbf16>, vector<32x128xf32> -> vector<32x128xf32>
    %12 = vector.broadcast %10 : vector<1x128xf32> to vector<32x128xf32>
    %13 = arith.addf %11, %12 : vector<32x128xf32>
    %cst_11 = arith.constant 0.000000e+00 : f32
    %14 = vector.broadcast %cst_11 : f32 to vector<32x128xf32>
    %15 = arith.maximumf %13, %14 : vector<32x128xf32>
    %16 = arith.truncf %15 : vector<32x128xf32> to vector<32x128xbf16>
    %c0_12 = arith.constant 0 : index
    %c0_13 = arith.constant 0 : index
    %17 = vector.load %arg6[%c0_12, %c0_13] : memref<128x128xbf16, #tpu.memory_space<vmem>>, vector<128x128xbf16>
    %c0_14 = arith.constant 0 : index
    %c0_15 = arith.constant 0 : index
    %18 = vector.load %arg7[%c0_14, %c0_15] : memref<1x128xf32, #tpu.memory_space<vmem>>, vector<1x128xf32>
    %cst_16 = arith.constant dense<0.000000e+00> : vector<32x128xf32>
    %19 = tpu.matmul %16, %17, %cst_16 {dimension_numbers = #tpu.dot_dimension_numbers<[1], [0], [0], [1], [0, 0, 1, 1], [], []>} : vector<32x128xbf16>, vector<128x128xbf16>, vector<32x128xf32> -> vector<32x128xf32>
    %20 = vector.broadcast %18 : vector<1x128xf32> to vector<32x128xf32>
    %21 = arith.addf %19, %20 : vector<32x128xf32>
    %22 = arith.truncf %21 : vector<32x128xf32> to vector<32x128xbf16>
    %c0_17 = arith.constant 0 : index
    %c0_18 = arith.constant 0 : index
    %23 = vector.load %arg8[%c0_17, %c0_18] : memref<32x128xbf16, #tpu.memory_space<vmem>>, vector<32x128xbf16>
    tpu.vector_store %arg8[%c0_17, %c0_18], %22 {strides = array<i32>} : memref<32x128xbf16, #tpu.memory_space<vmem>>, vector<32x128xbf16>,
    return
  }
  func.func @transform_0(%arg0: i32) -> (i32, i32) {
    %c0_i32 = arith.constant 0 : i32
    %c0_i32_0 = arith.constant 0 : i32
    return %arg0, %c0_i32 : i32, i32
  }
  func.func @transform_1(%arg0: i32) -> (i32, i32) {
    %c0_i32 = arith.constant 0 : i32
    %c0_i32_0 = arith.constant 0 : i32
    %c0_i32_1 = arith.constant 0 : i32
    return %c0_i32, %c0_i32_0 : i32, i32
  }
  func.func @transform_2(%arg0: i32) -> (i32, i32) {
    %c0_i32 = arith.constant 0 : i32
    %c0_i32_0 = arith.constant 0 : i32
    %c0_i32_1 = arith.constant 0 : i32
    return %c0_i32, %c0_i32_0 : i32, i32
  }
  func.func @transform_3(%arg0: i32) -> (i32, i32) {
    %c0_i32 = arith.constant 0 : i32
    %c0_i32_0 = arith.constant 0 : i32
    %c0_i32_1 = arith.constant 0 : i32
    return %c0_i32, %c0_i32_0 : i32, i32
  }
  func.func @transform_4(%arg0: i32) -> (i32, i32) {
    %c0_i32 = arith.constant 0 : i32
    %c0_i32_0 = arith.constant 0 : i32
    %c0_i32_1 = arith.constant 0 : i32
    return %c0_i32, %c0_i32_0 : i32, i32
  }
  func.func @transform_5(%arg0: i32) -> (i32, i32) {
    %c0_i32 = arith.constant 0 : i32
    %c0_i32_0 = arith.constant 0 : i32
    %c0_i32_1 = arith.constant 0 : i32
    return %c0_i32, %c0_i32_0 : i32, i32
  }
  func.func @transform_6(%arg0: i32) -> (i32, i32) {
    %c0_i32 = arith.constant 0 : i32
    %c0_i32_0 = arith.constant 0 : i32
    %c0_i32_1 = arith.constant 0 : i32
    return %c0_i32, %c0_i32_0 : i32, i32
  }
  func.func @transform_7(%arg0: i32) -> (i32, i32) {
    %c0_i32 = arith.constant 0 : i32
    %c0_i32_0 = arith.constant 0 : i32
    return %arg0, %c0_i32 : i32, i32
  }
}

module attributes {stable_mosaic.version = 11 : i64} {
  func.func @_mlp_kernel(%arg0: i32, %arg1: memref<32x384xbf16, #tpu.memory_space<vmem>>, %arg2: memref<384x128xbf16, #tpu.memory_space<vmem>>, %arg3: memref<1x128xf32, #tpu.memory_space<vmem>>, %arg4: memref<128x128xbf16, #tpu.memory_space<vmem>>, %arg5: memref<1x128xf32, #tpu.memory_space<vmem>>, %arg6: memref<128x128xbf16, #tpu.memory_space<vmem>>, %arg7: memref<1x128xf32, #tpu.memory_space<vmem>>, %arg8: memref<32x128xbf16, #tpu.memory_space<vmem>>) attributes {dimension_semantics = [#tpu.dimension_semantics<parallel>], iteration_bounds = array<i64: 2>, scalar_prefetch = 0 : i64, scratch_operands = 0 : i64, tpu.core_type = #tpu.core_type<tc>, window_params = [{transform_indices = @transform_0, window_bounds = array<i64: 32, 384>}, {pipeline_mode = #tpu.pipeline_mode<synchronous>, transform_indices = @transform_1, window_bounds = array<i64: 384, 128>}, {pipeline_mode = #tpu.pipeline_mode<synchronous>, transform_indices = @transform_2, window_bounds = array<i64: 1, 128>}, {pipeline_mode = #tpu.pipeline_mode<synchronous>, transform_indices = @transform_3, window_bounds = array<i64: 128, 128>}, {pipeline_mode = #tpu.pipeline_mode<synchronous>, transform_indices = @transform_4, window_bounds = array<i64: 1, 128>}, {pipeline_mode = #tpu.pipeline_mode<synchronous>, transform_indices = @transform_5, window_bounds = array<i64: 128, 128>}, {pipeline_mode = #tpu.pipeline_mode<synchronous>, transform_indices = @transform_6, window_bounds = array<i64: 1, 128>}, {transform_indices = @transform_7, window_bounds = array<i64: 32, 128>}]} {
    %c0 = arith.constant 0 : index
    %c0_0 = arith.constant 0 : index
    %0 = vector.load %arg1[%c0, %c0_0] : memref<32x384xbf16, #tpu.memory_space<vmem>>, vector<32x384xbf16>
    %c0_1 = arith.constant 0 : index
    %c0_2 = arith.constant 0 : index
    %1 = vector.load %arg2[%c0_1, %c0_2] : memref<384x128xbf16, #tpu.memory_space<vmem>>, vector<384x128xbf16>
    %c0_3 = arith.constant 0 : index
    %c0_4 = arith.constant 0 : index
    %2 = vector.load %arg3[%c0_3, %c0_4] : memref<1x128xf32, #tpu.memory_space<vmem>>, vector<1x128xf32>
    %cst = arith.constant dense<0.000000e+00> : vector<32x128xf32>
    %3 = tpu.matmul %0, %1, %cst {dimension_numbers = #tpu.dot_dimension_numbers<[1], [0], [0], [1], [0, 0, 1, 1], [], []>} : vector<32x384xbf16>, vector<384x128xbf16>, vector<32x128xf32> -> vector<32x128xf32>
    %4 = vector.broadcast %2 : vector<1x128xf32> to vector<32x128xf32>
    %5 = arith.addf %3, %4 : vector<32x128xf32>
    %cst_5 = arith.constant 0.000000e+00 : f32
    %6 = vector.broadcast %cst_5 : f32 to vector<32x128xf32>
    %7 = arith.maximumf %5, %6 : vector<32x128xf32>
    %8 = arith.truncf %7 : vector<32x128xf32> to vector<32x128xbf16>
    %c0_6 = arith.constant 0 : index
    %c0_7 = arith.constant 0 : index
    %9 = vector.load %arg4[%c0_6, %c0_7] : memref<128x128xbf16, #tpu.memory_space<vmem>>, vector<128x128xbf16>
    %c0_8 = arith.constant 0 : index
    %c0_9 = arith.constant 0 : index
    %10 = vector.load %arg5[%c0_8, %c0_9] : memref<1x128xf32, #tpu.memory_space<vmem>>, vector<1x128xf32>
    %cst_10 = arith.constant dense<0.000000e+00> : vector<32x128xf32>
    %11 = tpu.matmul %8, %9, %cst_10 {dimension_numbers = #tpu.dot_dimension_numbers<[1], [0], [0], [1], [0, 0, 1, 1], [], []>} : vector<32x128xbf16>, vector<128x128xbf16>, vector<32x128xf32> -> vector<32x128xf32>
    %12 = vector.broadcast %10 : vector<1x128xf32> to vector<32x128xf32>
    %13 = arith.addf %11, %12 : vector<32x128xf32>
    %cst_11 = arith.constant 0.000000e+00 : f32
    %14 = vector.broadcast %cst_11 : f32 to vector<32x128xf32>
    %15 = arith.maximumf %13, %14 : vector<32x128xf32>
    %16 = arith.truncf %15 : vector<32x128xf32> to vector<32x128xbf16>
    %c0_12 = arith.constant 0 : index
    %c0_13 = arith.constant 0 : index
    %17 = vector.load %arg6[%c0_12, %c0_13] : memref<128x128xbf16, #tpu.memory_space<vmem>>, vector<128x128xbf16>
    %c0_14 = arith.constant 0 : index
    %c0_15 = arith.constant 0 : index
    %18 = vector.load %arg7[%c0_14, %c0_15] : memref<1x128xf32, #tpu.memory_space<vmem>>, vector<1x128xf32>
    %cst_16 = arith.constant dense<0.000000e+00> : vector<32x128xf32>
    %19 = tpu.matmul %16, %17, %cst_16 {dimension_numbers = #tpu.dot_dimension_numbers<[1], [0], [0], [1], [0, 0, 1, 1], [], []>} : vector<32x128xbf16>, vector<128x128xbf16>, vector<32x128xf32> -> vector<32x128xf32>
    %20 = vector.broadcast %18 : vector<1x128xf32> to vector<32x128xf32>
    %21 = arith.addf %19, %20 : vector<32x128xf32>
    %22 = arith.truncf %21 : vector<32x128xf32> to vector<32x128xbf16>
    %c0_17 = arith.constant 0 : index
    %c0_18 = arith.constant 0 : index
    %23 = vector.load %arg8[%c0_17, %c0_18] : memref<32x128xbf16, #tpu.memory_space<vmem>>, vector<32x128xbf16>
    tpu.vector_store %arg8[%c0_17, %c0_18], %22 {strides = array<i32>} : memref<32x128xbf16, #tpu.memory_space<vmem>>, vector<32x128xbf16>,
    return
  }
  func.func @transform_0(%arg0: i32) -> (i32, i32) {
    %c0_i32 = arith.constant 0 : i32
    %c0_i32_0 = arith.constant 0 : i32
    return %arg0, %c0_i32 : i32, i32
  }
  func.func @transform_1(%arg0: i32) -> (i32, i32) {
    %c0_i32 = arith.constant 0 : i32
    %c0_i32_0 = arith.constant 0 : i32
    %c0_i32_1 = arith.constant 0 : i32
    return %c0_i32, %c0_i32_0 : i32, i32
  }
  func.func @transform_2(%arg0: i32) -> (i32, i32) {
    %c0_i32 = arith.constant 0 : i32
    %c0_i32_0 = arith.constant 0 : i32
    %c0_i32_1 = arith.constant 0 : i32
    return %c0_i32, %c0_i32_0 : i32, i32
  }
  func.func @transform_3(%arg0: i32) -> (i32, i32) {
    %c0_i32 = arith.constant 0 : i32
    %c0_i32_0 = arith.constant 0 : i32
    %c0_i32_1 = arith.constant 0 : i32
    return %c0_i32, %c0_i32_0 : i32, i32
  }
  func.func @transform_4(%arg0: i32) -> (i32, i32) {
    %c0_i32 = arith.constant 0 : i32
    %c0_i32_0 = arith.constant 0 : i32
    %c0_i32_1 = arith.constant 0 : i32
    return %c0_i32, %c0_i32_0 : i32, i32
  }
  func.func @transform_5(%arg0: i32) -> (i32, i32) {
    %c0_i32 = arith.constant 0 : i32
    %c0_i32_0 = arith.constant 0 : i32
    %c0_i32_1 = arith.constant 0 : i32
    return %c0_i32, %c0_i32_0 : i32, i32
  }
  func.func @transform_6(%arg0: i32) -> (i32, i32) {
    %c0_i32 = arith.constant 0 : i32
    %c0_i32_0 = arith.constant 0 : i32
    %c0_i32_1 = arith.constant 0 : i32
    return %c0_i32, %c0_i32_0 : i32, i32
  }
  func.func @transform_7(%arg0: i32) -> (i32, i32) {
    %c0_i32 = arith.constant 0 : i32
    %c0_i32_0 = arith.constant 0 : i32
    return %arg0, %c0_i32 : i32, i32
  }
}

</mosaic_0001>

<bundles_post_ra>
// kernel: tpu_custom_call.1
= control target key start
LH: loop header
LB: loop body
LE: loop exit
PB: predicated region body
PF: predicated region fallthrough
CT: control target
= control target key end

     0   :  { %12 = vsyncpa [#allocation3], 0  ;;  %s1937_s0 = inlined_call_operand.hbm [shape: bf16[64,384], index: 0, kind: input, shape index: {}]   ;;  %s1938_s1 = inlined_call_operand.hbm [shape: bf16[384,128], index: 1, kind: input, shape index: {}]   ;;  %s1939_s2 = inlined_call_operand.vmem [shape: f32[1,128], index: 2, kind: input, shape index: {}]   ;;  %s1940_s3 = inlined_call_operand.hbm [shape: bf16[128,128], index: 3, kind: input, shape index: {}]   ;;  %s1941_s4 = inlined_call_operand.vmem [shape: f32[1,128], index: 4, kind: input, shape index: {}]   ;;  %s1942_s5 = inlined_call_operand.hbm [shape: bf16[128,128], index: 5, kind: input, shape index: {}]   ;;  %s1943_s6 = inlined_call_operand.vmem [shape: f32[1,128], index: 6, kind: input, shape index: {}]   ;;  %s1944_s7 = inlined_call_operand.hbm [shape: bf16[64,128], index: 7, kind: output, shape index: {}]  }
   0x1   :  { %14 = vsyncpa [#allocation3 + $0x1], 0 }
   0x2   :  { %15 = vsyncpa [#allocation6], 0 }
   0x3   :  { %16 = vsyncpa [#allocation9], 0 }
   0x4   :  { %17 = vsyncpa [#allocation4], 0 }
   0x5   :  { %19 = vsyncpa [#allocation4 + $0x1], 0  ;;  %s1651_s24 = smov 0   ;;  %s1653_s25 = smov 0  }
   0x6   :  { %s1655_s26 = smov 0   ;;  %s1657_s27 = smov 0  }
   0x7 LB: > { %s1672_s28 = sadd.s32 4294967295, %s1598_s27   ;;  %s1070_s29 = sadd.s32 4294967294, %s1598_s27   ;;  %s1598_s27 = sphi %s1657_s27, %s1970_s27   ;;  %s1594_s26 = sphi %s1655_s26, %s1969_s26   ;;  %s1590_s25 = sphi %s1653_s25, %s1968_s25   ;;  %s1586_s24 = sphi %s1651_s24, %s1967_s24  }
   0x8   : > { %p45_p0 = scmp.ne.s32.totalorder %s1590_s25, %s1586_s24  ;;  %p1945_p1 = scmp.eq.s32.totalorder %s1672_s28, 0 }
   0x9   : > { %p201_p3 = scmp.eq.s32.totalorder %s1070_s29, 1  ;;  %p1071_p5 = scmp.ge.s32.totalorder %s1598_s27, 1 }
   0xa   : > { %p1681_p4 = por %p1945_p1, %p45_p0  ;;  %p208_p7 = scmp.lt.s32.totalorder %s1598_s27, 3 }
   0xb   : > { %p1686_p6 = por %p201_p3, %p45_p0  ;;  %s1600_s10 = smov [#allocation5]  }
   0xc   : > { %s1949_s30 = scalar_select %p1681_p4, 1, 0 }
   0xd   : > { %s1950_s8 = scalar_select %p1686_p6, 1, 0 }
   0xe   : > { %p1691_p8 = pnand %p1071_p5, %p208_p7  ;;  %s220_s11 = sshll.u32 %s1600_s10, 4  ;;  %s1695_s11 = int_to_ptr.vmem [resolvable:$true] %s220_s11 }
   0xf   : > { %1951 = sst [smem:[#allocation15_spill]] %s1950_s8  ;;  %s1601_s13 = smov [#allocation7]  }
  0x10   : > { %s1952_s9 = scalar_select %p1691_p8, 1, 0 }
  0x11   : > { %p1295_p9 = pneg %p1691_p8  ;;  %s236_s14 = sshll.u32 %s1601_s13, 4  ;;  %s1706_s14 = int_to_ptr.vmem [resolvable:$true] %s236_s14 }
  0x12   : > { %s1602_s15 = smov [#allocation8]   ;;  %s1410_s19 = scalar_lea.hbm %s1938_s1, 3072 }
  0x13   : > { %p1702_p11 = pnand %p1295_p9, %p1945_p1  ;;  %s1708_s16 = sshll.u32 %s1602_s15, 4  ;;  %s253_s16 = int_to_ptr.vmem [resolvable:$true] %s1708_s16 }
  0x14   : > { %p1411_p12 = scmp.ne.s32.totalorder %s1938_s1, %s1410_s19  ;;  %p1417_p5 = scmp.lt.u32.totalorder %s1410_s19, %s1938_s1 }
  0x15   : > { %p1718_p13 = pneg %p1702_p11 }
  0x17   : > { %p1413_p0 = pnand %p1718_p13, %p1411_p12 }
  0x19   : > { %p1414_p3 = pneg %p1413_p0 }
  0x1b   : > { %p1419_p7 = pnand %p1417_p5, %p1414_p3 }
  0x1d   : > { %1422 = shalt.err (!%p1419_p7)
}
  0x1e   : > { %s1423_s10 = scalar_lea.vmem %s1695_s11, 3072  ;;  %p1431_p2 = scmp.lt.s32.totalorder %s1695_s11, %s1695_s11 }
  0x1f   : > { %p1424_p9 = scmp.ne.s32.totalorder %s1695_s11, %s1423_s10  ;;  %p1432_p6 = scmp.lt.s32.totalorder %s1423_s10, %s1423_s10 }
  0x21   : > { %p1426_p10 = pnand %p1424_p9, %p1718_p13  ;;  %p1433_p12 = por %p1432_p6, %p1431_p2 }
  0x23   : > { %p1427_p1 = pneg %p1426_p10 }
  0x25   : > { %p1434_p0 = pnand %p1433_p12, %p1427_p1 }
  0x27   : > { %1437 = shalt.err (!%p1434_p0)
}
  0x28   : > { %s1603_s13 = smov 64   ;;  %s1604_s15 = smov 4  }
  0x29   : > { %1298 = dma.hbm_to_vmem [thread:$0]  (!%p1702_p11), %s1938_s1, 3072, %s1695_s11, [#allocation6], %s1603_s13, %s1603_s13, %s1604_s15  }
  0x2a   : > { %s1438_s21 = scalar_lea.hbm %s1940_s3, 1024 }
  0x2b   : > { %p1439_p1 = scmp.ne.s32.totalorder %s1940_s3, %s1438_s21  ;;  %p1445_p10 = scmp.lt.u32.totalorder %s1438_s21, %s1940_s3 }
  0x2d   : > { %p1441_p2 = pnand %p1439_p1, %p1718_p13 }
  0x2f   : > { %p1442_p6 = pneg %p1441_p2 }
  0x31   : > { %p1447_p3 = pnand %p1445_p10, %p1442_p6 }
  0x33   : > { %1450 = shalt.err (!%p1447_p3)
}
  0x34   : > { %s1451_s11 = scalar_lea.vmem %s1706_s14, 1024  ;;  %p1459_p12 = scmp.lt.s32.totalorder %s1706_s14, %s1706_s14 }
  0x35   : > { %p1452_p5 = scmp.ne.s32.totalorder %s1706_s14, %s1451_s11  ;;  %p1460_p0 = scmp.lt.s32.totalorder %s1451_s11, %s1451_s11 }
  0x37   : > { %p1454_p7 = pnand %p1452_p5, %p1718_p13  ;;  %p1461_p1 = por %p1460_p0, %p1459_p12 }
  0x39   : > { %p1455_p9 = pneg %p1454_p7 }
  0x3b   : > { %p1462_p2 = pnand %p1461_p1, %p1455_p9 }
  0x3d   : > { %1465 = shalt.err (!%p1462_p2)
}
  0x3e   : > { %1301 = dma.hbm_to_vmem [thread:$0]  (!%p1702_p11), %s1940_s3, 1024, %s1706_s14, [#allocation6], %s1603_s13, %s1603_s13, %s1604_s15  }
  0x3f   : > { %s1466_s20 = scalar_lea.hbm %s1942_s5, 1024 }
  0x40   : > { %p1467_p6 = scmp.ne.s32.totalorder %s1942_s5, %s1466_s20  ;;  %p1473_p5 = scmp.lt.u32.totalorder %s1466_s20, %s1942_s5 }
  0x42   : > { %p1469_p10 = pnand %p1467_p6, %p1718_p13 }
  0x44   : > { %p1470_p3 = pneg %p1469_p10 }
  0x46   : > { %p1475_p7 = pnand %p1473_p5, %p1470_p3 }
  0x48   : > { %1478 = shalt.err (!%p1475_p7)
}
  0x49   : > { %s1479_s11 = scalar_lea.vmem %s253_s16, 1024  ;;  %p1487_p1 = scmp.lt.s32.totalorder %s253_s16, %s253_s16 }
  0x4a   : > { %p1480_p9 = scmp.ne.s32.totalorder %s253_s16, %s1479_s11  ;;  %p1488_p2 = scmp.lt.s32.totalorder %s1479_s11, %s1479_s11 }
  0x4c   : > { %p1482_p12 = pnand %p1480_p9, %p1718_p13  ;;  %p1489_p4 = por %p1488_p2, %p1487_p1 }
  0x4e   : > { %p1483_p0 = pneg %p1482_p12 }
  0x50   : > { %p1490_p8 = pnand %p1489_p4, %p1483_p0 }
  0x52   : > { %1493 = shalt.err (!%p1490_p8)
}
  0x53   : > { %1304 = dma.hbm_to_vmem [thread:$0]  (!%p1702_p11), %s1942_s5, 1024, %s253_s16, [#allocation9], %s1603_s13, %s1603_s13, %s1604_s15  }
  0x54   : > { %s1791_s22 = sadd.s32 1, %s1598_s27   ;;  %s32_s17 = sadd.s32 1, %s1594_s26 }
  0x55   : > { %s29_s12 = ssub.s32 %s1598_s27, %s1791_s22  ;;  %p39_p8 = scmp.ne.s32.totalorder %s1594_s26, %s1590_s25 }
  0x56   : > { %p30_p4 = scmp.eq.s32.totalorder %s29_s12, 0  ;;  %p40_p13 = scmp.eq.s32.totalorder %s1598_s27, 0 }
  0x57   : > { %p1316_p6 = scmp.lt.s32.totalorder %s1598_s27, 2  ;;  %p1955_p3 = scmp.eq.s32.totalorder %s1672_s28, 1 }
  0x58   : > { %s1801_s18 = scalar_select %p30_p4, %s1594_s26, %s32_s17  }
  0x59   : > { %p41_p10 = por %p40_p13, %p39_p8  ;;  %p1805_p5 = por %p1955_p3, %p39_p8 }
  0x5a   : > { %s269_s20 = sand.u32 1, %s1594_s26   ;;  %s1277_s21 = smul.u32 768, %s1598_s27 }
  0x5b   : > { %s1276_s16 = smul.u32 48, %s269_s20  ;;  %p1816_p11 = pnand %p1316_p6, %p41_p10 }
  0x5c   : > { %s1814_s23 = scalar_lea.hbm %s1937_s0, %s1277_s21  ;;  %s1822_s14 = scalar_lea.sflag [#allocation3], %s269_s20 }
  0x5d   : > { %s273_s10 = scalar_lea.vmem [#allocation2], %s1276_s16  ;;  %s1494_s8 = scalar_lea.hbm %s1814_s23, 768 }
  0x5e   : > { %s281_s11 = sshll.u32 %s273_s10, 4  ;;  %p1495_p7 = scmp.ne.s32.totalorder %s1814_s23, %s1494_s8  ;;  %s1820_s11 = int_to_ptr.vmem [resolvable:$true] %s281_s11 }
  0x5f   : > { %p1496_p9 = pneg %p1816_p11  ;;  %s1499_s21 = scalar_lea.hbm %s1937_s0, 1536 }
  0x60   : > { %p1500_p1 = scmp.lt.u32.totalorder %s1814_s23, %s1937_s0  ;;  %p1501_p2 = scmp.lt.u32.totalorder %s1499_s21, %s1494_s8 }
  0x61   : > { %p1497_p12 = pnand %p1496_p9, %p1495_p7  ;;  %p1503_p8 = scmp.lt.u32.totalorder %s1494_s8, %s1814_s23 }
  0x62   : > { %p1502_p4 = por %p1501_p2, %p1500_p1 }
  0x63   : > { %p1498_p0 = pneg %p1497_p12 }
  0x64   : > { %p1504_p13 = por %p1503_p8, %p1502_p4 }
  0x66   : > { %p1505_p6 = pnand %p1504_p13, %p1498_p0 }
  0x68   : > { %1508 = shalt.err (!%p1505_p6)
}
  0x69   : > { %s1509_s20 = scalar_lea.vmem %s1820_s11, 768  ;;  %s1605_s16 = smov [#allocation2]  }
  0x6a   : > { %p1510_p10 = scmp.ne.s32.totalorder %s1820_s11, %s1509_s20  ;;  %s1514_s10 = sshll.u32 %s1605_s16, 4  ;;  %s1515_s10 = int_to_ptr.vmem [resolvable:$false] %s1514_s10 }
  0x6b   : > { %s1516_s12 = scalar_lea.vmem %s1515_s10, 1536  ;;  %p1517_p12 = scmp.lt.s32.totalorder %s1820_s11, %s1515_s10 }
  0x6c   : > { %p1512_p3 = pnand %p1510_p10, %p1496_p9  ;;  %p1518_p1 = scmp.lt.s32.totalorder %s1516_s12, %s1509_s20 }
  0x6e   : > { %p1513_p7 = pneg %p1512_p3  ;;  %p1519_p2 = por %p1518_p1, %p1517_p12 }
  0x70   : > { %p1520_p4 = pnand %p1519_p2, %p1513_p7 }
  0x72   : > { %1523 = shalt.err (!%p1520_p4)
}
  0x73   : > { %s1606_s8 = smov 192   ;;  %s1607_s17 = smov 12  }
  0x74   : > { %1308 = dma.hbm_to_vmem [thread:$0]  (!%p1816_p11), %s1814_s23, 768, %s1820_s11, %s1822_s14, %s1606_s8, %s1606_s8, %s1607_s17  }
  0x75   : > { %p1958_p9 = scmp.ne.s32.totalorder %s1952_s9, 0 }
  0x76   : > { %s1853_s21 = sand.u32 (!%p1958_p9), 1, %s1590_s25   ;;  %p1959_p0 = scmp.ne.s32.totalorder (!%p1958_p9), %s1949_s30, 0 }
  0x77   : > { %293 = sbr.rel (%p1958_p9) target bundleno = 856 (0x358), region = 48  ;;  %s296_s15 = scalar_lea.sflag (!%p1958_p9), [#allocation3], %s1853_s21 }
  0x78   : > { %s1278_s13 = smul.u32 (!%p1958_p9), 48, %s1853_s21 }
  0x7a   : > { %s1857_s20 = scalar_lea.vmem (!%p1958_p9), [#allocation2], %s1278_s13 }
  0x7e   : > { %1569 = dma.done.wait (%p1959_p0), %s296_s15, 768  }
  0x7f   : > { %1571 = vsyncadd (%p1959_p0), %s296_s15, 4294966528  ;;  %p1960_p11 = scmp.eq.s32.totalorder %s1672_s28, 0 }
  0x81   : > { %1573 = dma.done.wait (%p1960_p11), [#allocation6], 4096   ;;  %p1961_p8 = pmov %p1960_p11 }
  0x83   : > { %1575 = vsyncadd (%p1961_p8), [#allocation6], 4294963200  ;;  %p1962_p13 = pmov %p1961_p8 }
  0x84   : > { %p1963_p6 = pmov %p1961_p8 }
  0x85   : > { %1577 = dma.done.wait (%p1962_p13), [#allocation9], 1024  }
  0x86   : > { %1579 = vsyncadd (%p1963_p6), [#allocation9], 4294966272  ;;  %v1362_v0 = vld [vmem:[#allocation5 + $0x40] sm:$0xff]   ;;  %v1364_v2 = vld [vmem:[#allocation5 + $0x48] sm:$0xff]   ;;  %s1083_s11 = sshll.u32 %s1853_s21, 4  ;;  %s1146_s8 = sshll.u32 %s1672_s28, 8 }
  0x87   : > { %v1363_v1 = vld [vmem:[#allocation5] sm:$0xff]   ;;  %1158 = vmatprep.subr.bf16.mxu0 %v1362_v0  ;;  %v1366_v4 = vld [vmem:[#allocation5 + $0x8] sm:$0xff]   ;;  %v1367_v5 = vld [vmem:[#allocation5 + $0x50] sm:$0xff]   ;;  %s341_s10 = scalar_lea.vmem [#allocation10], %s1083_s11  ;;  %s1893_s15 = scalar_lea.hbm %s1944_s7, %s1146_s8 }
  0x88   : > { %1159 = vmatpush3.bf16.msra.mxu0 %v1363_v1  ;;  %v1365_v3 = vld [vmem:[#allocation5 + $0x80] sm:$0xff]   ;;  %v1368_v6 = vld [vmem:[#allocation5 + $0x88] sm:$0xff]   ;;  %v1369_v7 = vld [vmem:[#allocation5 + $0x10] sm:$0xff]   ;;  %s968_s12 = sshll.u32 %s341_s10, 4  ;;  %s955_s28 = scalar_lea.sflag [#allocation4], %s1853_s21  ;;  %s1888_s12 = int_to_ptr.vmem [resolvable:$true] %s968_s12 }
  0x89   : > { %1160 = vmatprep.subr.bf16.mxu0 %v1364_v2  ;;  %1216 = vmatprep.subr.bf16.mxu1 %v1365_v3  ;;  %v1370_v8 = vld [vmem:[#allocation5 + $0x58] sm:$0xff]   ;;  %v1371_v9 = vld [vmem:[#allocation5 + $0x90] sm:$0xff]   ;;  %v1373_v11 = vld [vmem:[#allocation5 + $0x60] sm:$0xff]   ;;  %s1608_s30 = smov [#allocation10]  }
  0x8a   : > { %1217 = vmatpush3.bf16.msra.mxu1 %v1365_v3  ;;  %v1372_v10 = vld [vmem:[#allocation5 + $0x18] sm:$0xff]   ;;  %v1375_v13 = vld [vmem:[#allocation5 + $0x20] sm:$0xff]   ;;  %v1376_v15 = vld [vmem:[#allocation5 + $0x68] sm:$0xff]   ;;  %s1528_s9 = sshll.u32 %s1608_s30, 4  ;;  %s1529_s9 = int_to_ptr.vmem [resolvable:$false] %s1528_s9 }
  0x8b   : > { %1218 = vmatprep.subr.bf16.mxu1 %v1368_v6  ;;  %v1374_v12 = vld [vmem:[#allocation5 + $0x98] sm:$0xff]   ;;  %v1377_v14 = vld [vmem:[#allocation5 + $0xa0] sm:$0xff]   ;;  %v1378_v16 = vld [vmem:[#allocation5 + $0x28] sm:$0xff]   ;;  %s1530_s23 = scalar_lea.vmem %s1529_s9, 512  ;;  %p1531_p12 = scmp.lt.s32.totalorder %s1888_s12, %s1529_s9 }
  0x8c   : > { %1161 = vmatpush3.bf16.msra.mxu0 %v1366_v4  ;;  %v1380_v17 = vld [vmem:[#allocation5 + $0xa8] sm:$0xff]   ;;  %v1379_v18 = vld [vmem:[#allocation5 + $0x70] sm:$0xff]   ;;  %v1382_v20 = vld [vmem:[#allocation5 + $0x78] sm:$0xff]  }
  0x8d   : > { %1162 = vmatprep.subr.bf16.mxu0 %v1367_v5  ;;  %v1381_v19 = vld [vmem:[#allocation5 + $0x30] sm:$0xff]   ;;  %v1384_v23 = vld [vmem:[#allocation5 + $0x38] sm:$0xff]   ;;  %v1394_v27 = vld [vmem:[#allocation7] sm:$0xff]  }
  0x8e   : > { %1219 = vmatpush3.bf16.msra.mxu1 %v1368_v6  ;;  %v1383_v21 = vld [vmem:[#allocation5 + $0xb0] sm:$0xff]   ;;  %v1388_v25 = vld [vmem:[#allocation5 + $0xb8] sm:$0xff]   ;;  %v1395_v30 = vld [vmem:[#allocation7 + $0x8] sm:$0xff]  }
  0x8f   : > { %1220 = vmatprep.subr.bf16.mxu1 %v1371_v9  ;;  %v1387_v22 = vld [vmem:[%s1857_s20 + $0x4] ss:$12 sps:$4 sm:$0xff]   ;;  %v1389_v24 = vld [vmem:[%s1857_s20 + $0x8] ss:$12 sps:$4 sm:$0xff]   ;;  %v1385_v26 = vld [vmem:[%s1857_s20] ss:$12 sps:$4 sm:$0xff]  }
  0x90   : > { %1163 = vmatpush3.bf16.msra.mxu0 %v1369_v7  ;;  %616 = vmatprep.mubr.bf16.mxu0 %v1387_v22  ;;  %v1391_v28 = vld [vmem:[%s1857_s20 + $0x1c] ss:$12 sps:$4 sm:$0xff]   ;;  %v1390_v29 = vld [vmem:[%s1857_s20 + $0x20] ss:$12 sps:$4 sm:$0xff]   ;;  %v1393_v32 = vld [vmem:[%s1857_s20 + $0x18] ss:$12 sps:$4 sm:$0xff]  }
  0x91   : > { %1164 = vmatprep.subr.bf16.mxu0 %v1370_v8  ;;  %1232 = vmatprep.mubr.bf16.mxu1 %v1389_v24  ;;  %v1396_v31 = vld [vmem:[#allocation7 + $0x10] sm:$0xff]   ;;  %v1397_v33 = vld [vmem:[#allocation7 + $0x18] sm:$0xff]   ;;  %v1398_v34 = vld [vmem:[#allocation7 + $0x20] sm:$0xff]   ;;  %s1524_s20 = scalar_lea.vmem %s1888_s12, 256 }
  0x92   : > { %1221 = vmatpush3.bf16.msra.mxu1 %v1371_v9  ;;  %v1399_v35 = vld [vmem:[#allocation7 + $0x28] sm:$0xff]   ;;  %v1400_v36 = vld [vmem:[#allocation7 + $0x30] sm:$0xff]   ;;  %v1401_v37 = vld [vmem:[#allocation7 + $0x38] sm:$0xff]   ;;  %p1525_p10 = scmp.ne.s32.totalorder %s1888_s12, %s1524_s20  ;;  %p1532_p1 = scmp.lt.s32.totalorder %s1530_s23, %s1524_s20 }
  0x93   : > { %1222 = vmatprep.subr.bf16.mxu1 %v1374_v12  ;;  %v1402_v38 = vld [vmem:[#allocation8] sm:$0xff]   ;;  %v1403_v39 = vld [vmem:[#allocation8 + $0x8] sm:$0xff]   ;;  %v1404_v40 = vld [vmem:[#allocation8 + $0x10] sm:$0xff]  }
  0x94   : > { %1165 = vmatpush3.bf16.msra.mxu0 %v1372_v10  ;;  %v1405_v41 = vld [vmem:[#allocation8 + $0x18] sm:$0xff]   ;;  %v1406_v42 = vld [vmem:[#allocation8 + $0x20] sm:$0xff]   ;;  %v1407_v43 = vld [vmem:[#allocation8 + $0x28] sm:$0xff]   ;;  %p1526_p3 = pnand %p1525_p10, %p1805_p5  ;;  %p1533_p2 = por %p1532_p1, %p1531_p12 }
  0x95   : > { %1166 = vmatprep.subr.bf16.mxu0 %v1373_v11  ;;  %v1084_v46 = vld [vmem:[%s1939_s2] ss:$0 sm:$0xff]  ;;  %v1408_v11 = vld [vmem:[#allocation8 + $0x30] sm:$0xff]  }
  0x96   : > { %1223 = vmatpush3.bf16.msra.mxu1 %v1374_v12  ;;  %v1409_v12 = vld [vmem:[#allocation8 + $0x38] sm:$0xff]   ;;  %p1527_p7 = pneg %p1526_p3 }
  0x97   : > { %1224 = vmatprep.subr.bf16.mxu1 %v1377_v14 }
  0x98   : > { %1167 = vmatpush3.bf16.msra.mxu0 %v1375_v13  ;;  %v1115_v13 = vld [vmem:[%s1941_s4] ss:$0 sm:$0xff]  ;;  %p1534_p4 = pnand %p1533_p2, %p1527_p7 }
  0x99   : > { %1168 = vmatprep.subr.bf16.mxu0 %v1376_v15 }
  0x9a   : > { %1225 = vmatpush3.bf16.msra.mxu1 %v1377_v14 }
  0x9b   : > { %1226 = vmatprep.subr.bf16.mxu1 %v1380_v17 }
  0x9c   : > { %1169 = vmatpush3.bf16.msra.mxu0 %v1378_v16 }
  0x9d   : > { %1170 = vmatprep.subr.bf16.mxu0 %v1379_v18 }
  0x9e   : > { %1227 = vmatpush3.bf16.msra.mxu1 %v1380_v17 }
  0x9f   : > { %1228 = vmatprep.subr.bf16.mxu1 %v1383_v21 }
  0xa0   : > { %1171 = vmatpush3.bf16.msra.mxu0 %v1381_v19 }
  0xa1   : > { %1172 = vmatprep.subr.bf16.mxu0 %v1382_v20 }
  0xa2   : > { %1229 = vmatpush3.bf16.msra.mxu1 %v1383_v21 }
  0xa3   : > { %1230 = vmatprep.subr.bf16.mxu1 %v1388_v25 }
  0xa4   : > { %1173 = vmatpush3.bf16.msra.mxu0 %v1384_v23 }
  0xa5   : > { %1236 = vmatprep.subr.bf16.mxu0 %v1394_v27 }
  0xa6   : > { %1231 = vmatpush3.bf16.msra.mxu1 %v1388_v25 }
  0xa7   : > { %617 = vmatmul.mubr.bf16.vlgmr.msra.gmra.mrb[0].mxu0 %v1385_v26  ;;  %1256 = vmatprep.subr.bf16.mxu1 %v1402_v38 }
  0xa8   : > { %624 = vmatprep.mubr.bf16.mxu0 %v1391_v28  ;;  %1237 = vmatpush3.bf16.msra.mxu0 %v1394_v27 }
  0xa9   : > { %1238 = vmatprep.subr.bf16.mxu0 %v1395_v30  ;;  %1233 = vmatmul.mubr.bf16.vlgmr.msra.gmra.mrb[0].mxu1 %v1390_v29  ;;  %v1124_v29 = vld [vmem:[%s1943_s6] ss:$0 sm:$0xff] }
  0xaa   : > { %1257 = vmatpush3.bf16.msra.mxu1 %v1402_v38 }
  0xab   : > { %1258 = vmatprep.subr.bf16.mxu1 %v1403_v39 }
  0xac   : > { %1239 = vmatpush3.bf16.msra.mxu0 %v1395_v30 }
  0xad   : > { %1240 = vmatprep.subr.bf16.mxu0 %v1396_v31 }
  0xae   : > { %1259 = vmatpush3.bf16.msra.mxu1 %v1403_v39 }
  0xaf   : > { %625 = vmatmul.mubr.bf16.gmra.mrb[4].mxu0 %v1393_v32  ;;  %1260 = vmatprep.subr.bf16.mxu1 %v1404_v40 }
  0xb0   : > { %1241 = vmatpush3.bf16.msra.mxu0 %v1396_v31 }
  0xb1   : > { %1242 = vmatprep.subr.bf16.mxu0 %v1397_v33 }
  0xb2   : > { %1261 = vmatpush3.bf16.msra.mxu1 %v1404_v40 }
  0xb3   : > { %1262 = vmatprep.subr.bf16.mxu1 %v1405_v41 }
  0xb4   : > { %1243 = vmatpush3.bf16.msra.mxu0 %v1397_v33 }
  0xb5   : > { %1244 = vmatprep.subr.bf16.mxu0 %v1398_v34 }
  0xb6   : > { %1263 = vmatpush3.bf16.msra.mxu1 %v1405_v41 }
  0xb7   : > { %1264 = vmatprep.subr.bf16.mxu1 %v1406_v42 }
  0xb8   : > { %1245 = vmatpush3.bf16.msra.mxu0 %v1398_v34 }
  0xb9   : > { %1246 = vmatprep.subr.bf16.mxu0 %v1399_v35 }
  0xba   : > { %1265 = vmatpush3.bf16.msra.mxu1 %v1406_v42 }
  0xbb   : > { %1266 = vmatprep.subr.bf16.mxu1 %v1407_v43 }
  0xbc   : > { %1247 = vmatpush3.bf16.msra.mxu0 %v1399_v35 }
  0xbd   : > { %1248 = vmatprep.subr.bf16.mxu0 %v1400_v36 }
  0xbe   : > { %1267 = vmatpush3.bf16.msra.mxu1 %v1407_v43 }
  0xbf   : > { %1268 = vmatprep.subr.bf16.mxu1 %v1408_v11 }
  0xc0   : > { %1249 = vmatpush3.bf16.msra.mxu0 %v1400_v36 }
  0xc1   : > { %1250 = vmatprep.subr.bf16.mxu0 %v1401_v37 }
  0xc2   : > { %1269 = vmatpush3.bf16.msra.mxu1 %v1408_v11 }
  0xc3   : > { %1270 = vmatprep.subr.bf16.mxu1 %v1409_v12 }
  0xc4   : > { %1251 = vmatpush3.bf16.msra.mxu0 %v1401_v37 }
  0xc6   : > { %1271 = vmatpush3.bf16.msra.mxu1 %v1409_v12 }
 0x17a   : > { %v1174_v44 = vpop.f32.mrb[0].mxu0 }
 0x17b   : > { %v1175_v45 = vpop.f32.mrb[1].mxu0 }
 0x17c   : > { %v1176_v47 = vadd.f32 %v1175_v45, %v1174_v44  ;;  %v1177_v48 = vpop.f32.mrb[2].mxu0  ;;  %v1234_v50 = vpop.f32.mrb[0].mxu1 }
 0x17d   : > { %v1178_v49 = vpop.f32.mrb[3].mxu0  ;;  %v667_v53 = vpop.f32.mrb[1].mxu1 }
 0x17e   : > { %v1179_v51 = vadd.f32 %v1178_v49, %v1177_v48  ;;  %v619_v52 = vadd.f32 %v1176_v47, %v1084_v46  ;;  %v1235_v54 = vpop.f32.mrb[2].mxu1 }
 0x17f   : > { %v670_v57 = vpop.f32.mrb[3].mxu1 }
 0x180   : > { %v668_v55 = vadd.f32 %v667_v53, %v619_v52  ;;  %v622_v56 = vadd.f32 %v1179_v51, %v1084_v46 }
 0x182   : > { %v671_v58 = vadd.f32 %v670_v57, %v622_v56  ;;  %v1180_v59 = vpop.f32.mrb[4].mxu0  ;;  %v682_v61 = vmax.f32 %v668_v55, 0.0 }
 0x183   : > { %v1181_v60 = vpop.f32.mrb[5].mxu0 }
 0x184   : > { %v683_v62 = vmax.f32 %v671_v58, 0.0  ;;  %v1182_v63 = vadd.f32 %v1181_v60, %v1180_v59  ;;  %v1183_v0 = vpop.f32.mrb[6].mxu0 }
 0x185   : > { %v1184_v1 = vpop.f32.mrb[7].mxu0 }
 0x186   : > { %v686_v2 = vpack.c.bf16 %v683_v62, %v682_v61  ;;  %v627_v3 = vadd.f32 %v1182_v63, %v1084_v46  ;;  %v1185_v4 = vadd.f32 %v1184_v1, %v1183_v0 }
 0x188   : > { %v676_v5 = vadd.f32 %v1234_v50, %v627_v3  ;;  %v630_v6 = vadd.f32 %v1185_v4, %v1084_v46  ;;  %1252 = vmatprep.mubr.bf16.mxu0 %v686_v2 }
 0x18a   : > { %v679_v7 = vadd.f32 %v1235_v54, %v630_v6  ;;  %v684_v8 = vmax.f32 %v676_v5, 0.0 }
 0x18c   : > { %v685_v9 = vmax.f32 %v679_v7, 0.0 }
 0x18e   : > { %v687_v10 = vpack.c.bf16 %v685_v9, %v684_v8 }
 0x190   : > { %1253 = vmatmul.mubr.bf16.vlgmr.msra.gmra.mrb[8].mxu0 %v687_v10 }
 0x263   : > { %v1254_v14 = vpop.f32.mrb[8].mxu0 }
 0x264   : > { %v802_v15 = vadd.f32 %v1254_v14, %v1115_v13  ;;  %v793_v16 = vpop.f32.mrb[9].mxu0 }
 0x265   : > { %v794_v17 = vadd.f32 %v1115_v13, %v793_v16  ;;  %v1255_v18 = vpop.f32.mrb[10].mxu0 }
 0x266   : > { %v805_v19 = vadd.f32 %v1255_v18, %v1115_v13  ;;  %v796_v20 = vpop.f32.mrb[11].mxu0  ;;  %v810_v22 = vmax.f32 %v802_v15, 0.0 }
 0x267   : > { %v797_v21 = vadd.f32 %v1115_v13, %v796_v20  ;;  %v808_v24 = vmax.f32 %v794_v17, 0.0 }
 0x268   : > { %v811_v23 = vmax.f32 %v805_v19, 0.0 }
 0x269   : > { %v809_v25 = vmax.f32 %v797_v21, 0.0 }
 0x26a   : > { %v813_v26 = vpack.c.bf16 %v811_v23, %v810_v22 }
 0x26b   : > { %v812_v27 = vpack.c.bf16 %v809_v25, %v808_v24 }
 0x26d   : > { %1272 = vmatprep.mubr.bf16.mxu1 %v812_v27 }
 0x26e   : > { %1273 = vmatmul.mubr.bf16.vlgmr.msra.gmra.mrb[4].mxu1 %v813_v26 }
 0x341   : > { %v1274_v28 = vpop.f32.mrb[4].mxu1 }
 0x342   : > { %v919_v30 = vpop.f32.mrb[5].mxu1  ;;  %v928_v32 = vadd.f32 %v1274_v28, %v1124_v29 }
 0x343   : > { %v1275_v31 = vpop.f32.mrb[6].mxu1  ;;  %v920_v35 = vadd.f32 %v1124_v29, %v919_v30 }
 0x344   : > { %v931_v33 = vadd.f32 %v1275_v31, %v1124_v29  ;;  %v922_v34 = vpop.f32.mrb[7].mxu1 }
 0x345   : > { %v923_v36 = vadd.f32 %v1124_v29, %v922_v34 }
 0x346   : > { %v1155_v37 = vpack.c.bf16 %v931_v33, %v928_v32 }
 0x347   : > { %v1150_v38 = vpack.c.bf16 %v923_v36, %v920_v35 }
 0x348   : > { %1157 = vst [vmem:[%s341_s10 + $0x8] sm:$0xff] %v1155_v37  }
 0x349   : > { %1151 = vst [vmem:[%s341_s10] sm:$0xff] %v1150_v38  }
 0x34a   : > { %1537 = shalt.err (!%p1534_p4)
}
 0x34b   : > { %s1538_s29 = scalar_lea.hbm %s1893_s15, 256  ;;  %s1542_s16 = scalar_lea.hbm %s1944_s7, 512 }
 0x34c   : > { %p1539_p9 = scmp.ne.s32.totalorder %s1893_s15, %s1538_s29  ;;  %p1543_p8 = scmp.lt.u32.totalorder %s1893_s15, %s1944_s7 }
 0x34d   : > { %p1544_p13 = scmp.lt.u32.totalorder %s1542_s16, %s1538_s29  ;;  %p1546_p10 = scmp.lt.u32.totalorder %s1538_s29, %s1893_s15 }
 0x34e   : > { %p1540_p0 = pnand %p1539_p9, %p1805_p5 }
 0x34f   : > { %p1545_p6 = por %p1544_p13, %p1543_p8 }
 0x350   : > { %p1541_p11 = pneg %p1540_p0 }
 0x351   : > { %p1547_p3 = por %p1546_p10, %p1545_p6 }
 0x353   : > { %p1548_p7 = pnand %p1547_p3, %p1541_p11 }
 0x355   : > { %1551 = shalt.err (!%p1548_p7)
}
 0x356   : > { %s1609_s17 = smov 64   ;;  %s1610_s13 = smov 4  }
 0x357   : > { %1293 = dma.vmem_to_hbm [thread:$0]  (%p1805_p5), %s1888_s12, 256, %s1893_s15, %s955_s28, %s1609_s17, %s1609_s17, %s1610_s13  }
 0x358 PF: > { %s1964_s20 = sld [smem:[#allocation15_spill]]  ;;  %s983_s30 = sand.u32 1, %s1586_s24  }
 0x359   : > { %p1966_p1 = scmp.ge.s32.totalorder %s1598_s27, 2  ;;  %s984_s9 = scalar_lea.sflag [#allocation4], %s983_s30 }
 0x35e   : > { %p1965_p12 = scmp.ne.s32.totalorder %s1964_s20, 0 }
 0x360   : > { %p1310_p2 = pnand %p1966_p1, %p1965_p12 }
 0x362   : > { %1581 = dma.done.wait (!%p1310_p2), %s984_s9, 256  }
 0x363   : > { %1583 = vsyncadd (!%p1310_p2), %s984_s9, 4294967040  ;;  %p22_p4 = scmp.ge.s32.totalorder %s1791_s22, 4   ;;  %s1967_s24 = smov %s1590_s25 }
 0x364   : > { %s1968_s25 = smov %s1594_s26  ;;  %s1969_s26 = smov %s1801_s18 }
 0x365   : > { %s1970_s27 = smov %s1791_s22  ;;  %24 = sbr.rel (!%p22_p4) target bundleno = 7 (0x7), region = 105 }
 0x36c   :  { %989 = vsyncpa [#allocation3], 1 }
 0x36d   :  { %991 = vsyncpa [#allocation3 + $0x1], 1 }
 0x36e   :  { %992 = vsyncpa [#allocation6], 1 }
 0x36f   :  { %993 = vsyncpa [#allocation9], 1 }
 0x370   :  { %994 = vsyncpa [#allocation4], 1 }
 0x371   :  { %996 = vsyncpa [#allocation4 + $0x1], 1 }

// kernel: tpu_custom_call.1
= control target key start
LH: loop header
LB: loop body
LE: loop exit
PB: predicated region body
PF: predicated region fallthrough
CT: control target
= control target key end

     0   :  { %12 = vsyncpa [#allocation3], 0  ;;  %s1937_s0 = inlined_call_operand.hbm [shape: bf16[64,384], index: 0, kind: input, shape index: {}]   ;;  %s1938_s1 = inlined_call_operand.hbm [shape: bf16[384,128], index: 1, kind: input, shape index: {}]   ;;  %s1939_s2 = inlined_call_operand.vmem [shape: f32[1,128], index: 2, kind: input, shape index: {}]   ;;  %s1940_s3 = inlined_call_operand.hbm [shape: bf16[128,128], index: 3, kind: input, shape index: {}]   ;;  %s1941_s4 = inlined_call_operand.vmem [shape: f32[1,128], index: 4, kind: input, shape index: {}]   ;;  %s1942_s5 = inlined_call_operand.hbm [shape: bf16[128,128], index: 5, kind: input, shape index: {}]   ;;  %s1943_s6 = inlined_call_operand.vmem [shape: f32[1,128], index: 6, kind: input, shape index: {}]   ;;  %s1944_s7 = inlined_call_operand.hbm [shape: bf16[64,128], index: 7, kind: output, shape index: {}]  }
   0x1   :  { %14 = vsyncpa [#allocation3 + $0x1], 0 }
   0x2   :  { %15 = vsyncpa [#allocation6], 0 }
   0x3   :  { %16 = vsyncpa [#allocation9], 0 }
   0x4   :  { %17 = vsyncpa [#allocation4], 0 }
   0x5   :  { %19 = vsyncpa [#allocation4 + $0x1], 0  ;;  %s1651_s24 = smov 0   ;;  %s1653_s25 = smov 0  }
   0x6   :  { %s1655_s26 = smov 0   ;;  %s1657_s27 = smov 0  }
   0x7 LB: > { %s1672_s28 = sadd.s32 4294967295, %s1598_s27   ;;  %s1070_s29 = sadd.s32 4294967294, %s1598_s27   ;;  %s1598_s27 = sphi %s1657_s27, %s1970_s27   ;;  %s1594_s26 = sphi %s1655_s26, %s1969_s26   ;;  %s1590_s25 = sphi %s1653_s25, %s1968_s25   ;;  %s1586_s24 = sphi %s1651_s24, %s1967_s24  }
   0x8   : > { %p45_p0 = scmp.ne.s32.totalorder %s1590_s25, %s1586_s24  ;;  %p1945_p1 = scmp.eq.s32.totalorder %s1672_s28, 0 }
   0x9   : > { %p201_p3 = scmp.eq.s32.totalorder %s1070_s29, 1  ;;  %p1071_p5 = scmp.ge.s32.totalorder %s1598_s27, 1 }
   0xa   : > { %p1681_p4 = por %p1945_p1, %p45_p0  ;;  %p208_p7 = scmp.lt.s32.totalorder %s1598_s27, 3 }
   0xb   : > { %p1686_p6 = por %p201_p3, %p45_p0  ;;  %s1600_s10 = smov [#allocation5]  }
   0xc   : > { %s1949_s30 = scalar_select %p1681_p4, 1, 0 }
   0xd   : > { %s1950_s8 = scalar_select %p1686_p6, 1, 0 }
   0xe   : > { %p1691_p8 = pnand %p1071_p5, %p208_p7  ;;  %s220_s11 = sshll.u32 %s1600_s10, 4  ;;  %s1695_s11 = int_to_ptr.vmem [resolvable:$true] %s220_s11 }
   0xf   : > { %1951 = sst [smem:[#allocation15_spill]] %s1950_s8  ;;  %s1601_s13 = smov [#allocation7]  }
  0x10   : > { %s1952_s9 = scalar_select %p1691_p8, 1, 0 }
  0x11   : > { %p1295_p9 = pneg %p1691_p8  ;;  %s236_s14 = sshll.u32 %s1601_s13, 4  ;;  %s1706_s14 = int_to_ptr.vmem [resolvable:$true] %s236_s14 }
  0x12   : > { %s1602_s15 = smov [#allocation8]   ;;  %s1410_s19 = scalar_lea.hbm %s1938_s1, 3072 }
  0x13   : > { %p1702_p11 = pnand %p1295_p9, %p1945_p1  ;;  %s1708_s16 = sshll.u32 %s1602_s15, 4  ;;  %s253_s16 = int_to_ptr.vmem [resolvable:$true] %s1708_s16 }
  0x14   : > { %p1411_p12 = scmp.ne.s32.totalorder %s1938_s1, %s1410_s19  ;;  %p1417_p5 = scmp.lt.u32.totalorder %s1410_s19, %s1938_s1 }
  0x15   : > { %p1718_p13 = pneg %p1702_p11 }
  0x17   : > { %p1413_p0 = pnand %p1718_p13, %p1411_p12 }
  0x19   : > { %p1414_p3 = pneg %p1413_p0 }
  0x1b   : > { %p1419_p7 = pnand %p1417_p5, %p1414_p3 }
  0x1d   : > { %1422 = shalt.err (!%p1419_p7)
}
  0x1e   : > { %s1423_s10 = scalar_lea.vmem %s1695_s11, 3072  ;;  %p1431_p2 = scmp.lt.s32.totalorder %s1695_s11, %s1695_s11 }
  0x1f   : > { %p1424_p9 = scmp.ne.s32.totalorder %s1695_s11, %s1423_s10  ;;  %p1432_p6 = scmp.lt.s32.totalorder %s1423_s10, %s1423_s10 }
  0x21   : > { %p1426_p10 = pnand %p1424_p9, %p1718_p13  ;;  %p1433_p12 = por %p1432_p6, %p1431_p2 }
  0x23   : > { %p1427_p1 = pneg %p1426_p10 }
  0x25   : > { %p1434_p0 = pnand %p1433_p12, %p1427_p1 }
  0x27   : > { %1437 = shalt.err (!%p1434_p0)
}
  0x28   : > { %s1603_s13 = smov 64   ;;  %s1604_s15 = smov 4  }
  0x29   : > { %1298 = dma.hbm_to_vmem [thread:$0]  (!%p1702_p11), %s1938_s1, 3072, %s1695_s11, [#allocation6], %s1603_s13, %s1603_s13, %s1604_s15  }
  0x2a   : > { %s1438_s21 = scalar_lea.hbm %s1940_s3, 1024 }
  0x2b   : > { %p1439_p1 = scmp.ne.s32.totalorder %s1940_s3, %s1438_s21  ;;  %p1445_p10 = scmp.lt.u32.totalorder %s1438_s21, %s1940_s3 }
  0x2d   : > { %p1441_p2 = pnand %p1439_p1, %p1718_p13 }
  0x2f   : > { %p1442_p6 = pneg %p1441_p2 }
  0x31   : > { %p1447_p3 = pnand %p1445_p10, %p1442_p6 }
  0x33   : > { %1450 = shalt.err (!%p1447_p3)
}
  0x34   : > { %s1451_s11 = scalar_lea.vmem %s1706_s14, 1024  ;;  %p1459_p12 = scmp.lt.s32.totalorder %s1706_s14, %s1706_s14 }
  0x35   : > { %p1452_p5 = scmp.ne.s32.totalorder %s1706_s14, %s1451_s11  ;;  %p1460_p0 = scmp.lt.s32.totalorder %s1451_s11, %s1451_s11 }
  0x37   : > { %p1454_p7 = pnand %p1452_p5, %p1718_p13  ;;  %p1461_p1 = por %p1460_p0, %p1459_p12 }
  0x39   : > { %p1455_p9 = pneg %p1454_p7 }
  0x3b   : > { %p1462_p2 = pnand %p1461_p1, %p1455_p9 }
  0x3d   : > { %1465 = shalt.err (!%p1462_p2)
}
  0x3e   : > { %1301 = dma.hbm_to_vmem [thread:$0]  (!%p1702_p11), %s1940_s3, 1024, %s1706_s14, [#allocation6], %s1603_s13, %s1603_s13, %s1604_s15  }
  0x3f   : > { %s1466_s20 = scalar_lea.hbm %s1942_s5, 1024 }
  0x40   : > { %p1467_p6 = scmp.ne.s32.totalorder %s1942_s5, %s1466_s20  ;;  %p1473_p5 = scmp.lt.u32.totalorder %s1466_s20, %s1942_s5 }
  0x42   : > { %p1469_p10 = pnand %p1467_p6, %p1718_p13 }
  0x44   : > { %p1470_p3 = pneg %p1469_p10 }
  0x46   : > { %p1475_p7 = pnand %p1473_p5, %p1470_p3 }
  0x48   : > { %1478 = shalt.err (!%p1475_p7)
}
  0x49   : > { %s1479_s11 = scalar_lea.vmem %s253_s16, 1024  ;;  %p1487_p1 = scmp.lt.s32.totalorder %s253_s16, %s253_s16 }
  0x4a   : > { %p1480_p9 = scmp.ne.s32.totalorder %s253_s16, %s1479_s11  ;;  %p1488_p2 = scmp.lt.s32.totalorder %s1479_s11, %s1479_s11 }
  0x4c   : > { %p1482_p12 = pnand %p1480_p9, %p1718_p13  ;;  %p1489_p4 = por %p1488_p2, %p1487_p1 }
  0x4e   : > { %p1483_p0 = pneg %p1482_p12 }
  0x50   : > { %p1490_p8 = pnand %p1489_p4, %p1483_p0 }
  0x52   : > { %1493 = shalt.err (!%p1490_p8)
}
  0x53   : > { %1304 = dma.hbm_to_vmem [thread:$0]  (!%p1702_p11), %s1942_s5, 1024, %s253_s16, [#allocation9], %s1603_s13, %s1603_s13, %s1604_s15  }
  0x54   : > { %s1791_s22 = sadd.s32 1, %s1598_s27   ;;  %s32_s17 = sadd.s32 1, %s1594_s26 }
  0x55   : > { %s29_s12 = ssub.s32 %s1598_s27, %s1791_s22  ;;  %p39_p8 = scmp.ne.s32.totalorder %s1594_s26, %s1590_s25 }
  0x56   : > { %p30_p4 = scmp.eq.s32.totalorder %s29_s12, 0  ;;  %p40_p13 = scmp.eq.s32.totalorder %s1598_s27, 0 }
  0x57   : > { %p1316_p6 = scmp.lt.s32.totalorder %s1598_s27, 2  ;;  %p1955_p3 = scmp.eq.s32.totalorder %s1672_s28, 1 }
  0x58   : > { %s1801_s18 = scalar_select %p30_p4, %s1594_s26, %s32_s17  }
  0x59   : > { %p41_p10 = por %p40_p13, %p39_p8  ;;  %p1805_p5 = por %p1955_p3, %p39_p8 }
  0x5a   : > { %s269_s20 = sand.u32 1, %s1594_s26   ;;  %s1277_s21 = smul.u32 768, %s1598_s27 }
  0x5b   : > { %s1276_s16 = smul.u32 48, %s269_s20  ;;  %p1816_p11 = pnand %p1316_p6, %p41_p10 }
  0x5c   : > { %s1814_s23 = scalar_lea.hbm %s1937_s0, %s1277_s21  ;;  %s1822_s14 = scalar_lea.sflag [#allocation3], %s269_s20 }
  0x5d   : > { %s273_s10 = scalar_lea.vmem [#allocation2], %s1276_s16  ;;  %s1494_s8 = scalar_lea.hbm %s1814_s23, 768 }
  0x5e   : > { %s281_s11 = sshll.u32 %s273_s10, 4  ;;  %p1495_p7 = scmp.ne.s32.totalorder %s1814_s23, %s1494_s8  ;;  %s1820_s11 = int_to_ptr.vmem [resolvable:$true] %s281_s11 }
  0x5f   : > { %p1496_p9 = pneg %p1816_p11  ;;  %s1499_s21 = scalar_lea.hbm %s1937_s0, 1536 }
  0x60   : > { %p1500_p1 = scmp.lt.u32.totalorder %s1814_s23, %s1937_s0  ;;  %p1501_p2 = scmp.lt.u32.totalorder %s1499_s21, %s1494_s8 }
  0x61   : > { %p1497_p12 = pnand %p1496_p9, %p1495_p7  ;;  %p1503_p8 = scmp.lt.u32.totalorder %s1494_s8, %s1814_s23 }
  0x62   : > { %p1502_p4 = por %p1501_p2, %p1500_p1 }
  0x63   : > { %p1498_p0 = pneg %p1497_p12 }
  0x64   : > { %p1504_p13 = por %p1503_p8, %p1502_p4 }
  0x66   : > { %p1505_p6 = pnand %p1504_p13, %p1498_p0 }
  0x68   : > { %1508 = shalt.err (!%p1505_p6)
}
  0x69   : > { %s1509_s20 = scalar_lea.vmem %s1820_s11, 768  ;;  %s1605_s16 = smov [#allocation2]  }
  0x6a   : > { %p1510_p10 = scmp.ne.s32.totalorder %s1820_s11, %s1509_s20  ;;  %s1514_s10 = sshll.u32 %s1605_s16, 4  ;;  %s1515_s10 = int_to_ptr.vmem [resolvable:$false] %s1514_s10 }
  0x6b   : > { %s1516_s12 = scalar_lea.vmem %s1515_s10, 1536  ;;  %p1517_p12 = scmp.lt.s32.totalorder %s1820_s11, %s1515_s10 }
  0x6c   : > { %p1512_p3 = pnand %p1510_p10, %p1496_p9  ;;  %p1518_p1 = scmp.lt.s32.totalorder %s1516_s12, %s1509_s20 }
  0x6e   : > { %p1513_p7 = pneg %p1512_p3  ;;  %p1519_p2 = por %p1518_p1, %p1517_p12 }
  0x70   : > { %p1520_p4 = pnand %p1519_p2, %p1513_p7 }
  0x72   : > { %1523 = shalt.err (!%p1520_p4)
}
  0x73   : > { %s1606_s8 = smov 192   ;;  %s1607_s17 = smov 12  }
  0x74   : > { %1308 = dma.hbm_to_vmem [thread:$0]  (!%p1816_p11), %s1814_s23, 768, %s1820_s11, %s1822_s14, %s1606_s8, %s1606_s8, %s1607_s17  }
  0x75   : > { %p1958_p9 = scmp.ne.s32.totalorder %s1952_s9, 0 }
  0x76   : > { %s1853_s21 = sand.u32 (!%p1958_p9), 1, %s1590_s25   ;;  %p1959_p0 = scmp.ne.s32.totalorder (!%p1958_p9), %s1949_s30, 0 }
  0x77   : > { %293 = sbr.rel (%p1958_p9) target bundleno = 856 (0x358), region = 48  ;;  %s296_s15 = scalar_lea.sflag (!%p1958_p9), [#allocation3], %s1853_s21 }
  0x78   : > { %s1278_s13 = smul.u32 (!%p1958_p9), 48, %s1853_s21 }
  0x7a   : > { %s1857_s20 = scalar_lea.vmem (!%p1958_p9), [#allocation2], %s1278_s13 }
  0x7e   : > { %1569 = dma.done.wait (%p1959_p0), %s296_s15, 768  }
  0x7f   : > { %1571 = vsyncadd (%p1959_p0), %s296_s15, 4294966528  ;;  %p1960_p11 = scmp.eq.s32.totalorder %s1672_s28, 0 }
  0x81   : > { %1573 = dma.done.wait (%p1960_p11), [#allocation6], 4096   ;;  %p1961_p8 = pmov %p1960_p11 }
  0x83   : > { %1575 = vsyncadd (%p1961_p8), [#allocation6], 4294963200  ;;  %p1962_p13 = pmov %p1961_p8 }
  0x84   : > { %p1963_p6 = pmov %p1961_p8 }
  0x85   : > { %1577 = dma.done.wait (%p1962_p13), [#allocation9], 1024  }
  0x86   : > { %1579 = vsyncadd (%p1963_p6), [#allocation9], 4294966272  ;;  %v1362_v0 = vld [vmem:[#allocation5 + $0x40] sm:$0xff]   ;;  %v1364_v2 = vld [vmem:[#allocation5 + $0x48] sm:$0xff]   ;;  %s1083_s11 = sshll.u32 %s1853_s21, 4  ;;  %s1146_s8 = sshll.u32 %s1672_s28, 8 }
  0x87   : > { %v1363_v1 = vld [vmem:[#allocation5] sm:$0xff]   ;;  %1158 = vmatprep.subr.bf16.mxu0 %v1362_v0  ;;  %v1366_v4 = vld [vmem:[#allocation5 + $0x8] sm:$0xff]   ;;  %v1367_v5 = vld [vmem:[#allocation5 + $0x50] sm:$0xff]   ;;  %s341_s10 = scalar_lea.vmem [#allocation10], %s1083_s11  ;;  %s1893_s15 = scalar_lea.hbm %s1944_s7, %s1146_s8 }
  0x88   : > { %1159 = vmatpush3.bf16.msra.mxu0 %v1363_v1  ;;  %v1365_v3 = vld [vmem:[#allocation5 + $0x80] sm:$0xff]   ;;  %v1368_v6 = vld [vmem:[#allocation5 + $0x88] sm:$0xff]   ;;  %v1369_v7 = vld [vmem:[#allocation5 + $0x10] sm:$0xff]   ;;  %s968_s12 = sshll.u32 %s341_s10, 4  ;;  %s955_s28 = scalar_lea.sflag [#allocation4], %s1853_s21  ;;  %s1888_s12 = int_to_ptr.vmem [resolvable:$true] %s968_s12 }
  0x89   : > { %1160 = vmatprep.subr.bf16.mxu0 %v1364_v2  ;;  %1216 = vmatprep.subr.bf16.mxu1 %v1365_v3  ;;  %v1370_v8 = vld [vmem:[#allocation5 + $0x58] sm:$0xff]   ;;  %v1371_v9 = vld [vmem:[#allocation5 + $0x90] sm:$0xff]   ;;  %v1373_v11 = vld [vmem:[#allocation5 + $0x60] sm:$0xff]   ;;  %s1608_s30 = smov [#allocation10]  }
  0x8a   : > { %1217 = vmatpush3.bf16.msra.mxu1 %v1365_v3  ;;  %v1372_v10 = vld [vmem:[#allocation5 + $0x18] sm:$0xff]   ;;  %v1375_v13 = vld [vmem:[#allocation5 + $0x20] sm:$0xff]   ;;  %v1376_v15 = vld [vmem:[#allocation5 + $0x68] sm:$0xff]   ;;  %s1528_s9 = sshll.u32 %s1608_s30, 4  ;;  %s1529_s9 = int_to_ptr.vmem [resolvable:$false] %s1528_s9 }
  0x8b   : > { %1218 = vmatprep.subr.bf16.mxu1 %v1368_v6  ;;  %v1374_v12 = vld [vmem:[#allocation5 + $0x98] sm:$0xff]   ;;  %v1377_v14 = vld [vmem:[#allocation5 + $0xa0] sm:$0xff]   ;;  %v1378_v16 = vld [vmem:[#allocation5 + $0x28] sm:$0xff]   ;;  %s1530_s23 = scalar_lea.vmem %s1529_s9, 512  ;;  %p1531_p12 = scmp.lt.s32.totalorder %s1888_s12, %s1529_s9 }
  0x8c   : > { %1161 = vmatpush3.bf16.msra.mxu0 %v1366_v4  ;;  %v1380_v17 = vld [vmem:[#allocation5 + $0xa8] sm:$0xff]   ;;  %v1379_v18 = vld [vmem:[#allocation5 + $0x70] sm:$0xff]   ;;  %v1382_v20 = vld [vmem:[#allocation5 + $0x78] sm:$0xff]  }
  0x8d   : > { %1162 = vmatprep.subr.bf16.mxu0 %v1367_v5  ;;  %v1381_v19 = vld [vmem:[#allocation5 + $0x30] sm:$0xff]   ;;  %v1384_v23 = vld [vmem:[#allocation5 + $0x38] sm:$0xff]   ;;  %v1394_v27 = vld [vmem:[#allocation7] sm:$0xff]  }
  0x8e   : > { %1219 = vmatpush3.bf16.msra.mxu1 %v1368_v6  ;;  %v1383_v21 = vld [vmem:[#allocation5 + $0xb0] sm:$0xff]   ;;  %v1388_v25 = vld [vmem:[#allocation5 + $0xb8] sm:$0xff]   ;;  %v1395_v30 = vld [vmem:[#allocation7 + $0x8] sm:$0xff]  }
  0x8f   : > { %1220 = vmatprep.subr.bf16.mxu1 %v1371_v9  ;;  %v1387_v22 = vld [vmem:[%s1857_s20 + $0x4] ss:$12 sps:$4 sm:$0xff]   ;;  %v1389_v24 = vld [vmem:[%s1857_s20 + $0x8] ss:$12 sps:$4 sm:$0xff]   ;;  %v1385_v26 = vld [vmem:[%s1857_s20] ss:$12 sps:$4 sm:$0xff]  }
  0x90   : > { %1163 = vmatpush3.bf16.msra.mxu0 %v1369_v7  ;;  %616 = vmatprep.mubr.bf16.mxu0 %v1387_v22  ;;  %v1391_v28 = vld [vmem:[%s1857_s20 + $0x1c] ss:$12 sps:$4 sm:$0xff]   ;;  %v1390_v29 = vld [vmem:[%s1857_s20 + $0x20] ss:$12 sps:$4 sm:$0xff]   ;;  %v1393_v32 = vld [vmem:[%s1857_s20 + $0x18] ss:$12 sps:$4 sm:$0xff]  }
  0x91   : > { %1164 = vmatprep.subr.bf16.mxu0 %v1370_v8  ;;  %1232 = vmatprep.mubr.bf16.mxu1 %v1389_v24  ;;  %v1396_v31 = vld [vmem:[#allocation7 + $0x10] sm:$0xff]   ;;  %v1397_v33 = vld [vmem:[#allocation7 + $0x18] sm:$0xff]   ;;  %v1398_v34 = vld [vmem:[#allocation7 + $0x20] sm:$0xff]   ;;  %s1524_s20 = scalar_lea.vmem %s1888_s12, 256 }
  0x92   : > { %1221 = vmatpush3.bf16.msra.mxu1 %v1371_v9  ;;  %v1399_v35 = vld [vmem:[#allocation7 + $0x28] sm:$0xff]   ;;  %v1400_v36 = vld [vmem:[#allocation7 + $0x30] sm:$0xff]   ;;  %v1401_v37 = vld [vmem:[#allocation7 + $0x38] sm:$0xff]   ;;  %p1525_p10 = scmp.ne.s32.totalorder %s1888_s12, %s1524_s20  ;;  %p1532_p1 = scmp.lt.s32.totalorder %s1530_s23, %s1524_s20 }
  0x93   : > { %1222 = vmatprep.subr.bf16.mxu1 %v1374_v12  ;;  %v1402_v38 = vld [vmem:[#allocation8] sm:$0xff]   ;;  %v1403_v39 = vld [vmem:[#allocation8 + $0x8] sm:$0xff]   ;;  %v1404_v40 = vld [vmem:[#allocation8 + $0x10] sm:$0xff]  }
  0x94   : > { %1165 = vmatpush3.bf16.msra.mxu0 %v1372_v10  ;;  %v1405_v41 = vld [vmem:[#allocation8 + $0x18] sm:$0xff]   ;;  %v1406_v42 = vld [vmem:[#allocation8 + $0x20] sm:$0xff]   ;;  %v1407_v43 = vld [vmem:[#allocation8 + $0x28] sm:$0xff]   ;;  %p1526_p3 = pnand %p1525_p10, %p1805_p5  ;;  %p1533_p2 = por %p1532_p1, %p1531_p12 }
  0x95   : > { %1166 = vmatprep.subr.bf16.mxu0 %v1373_v11  ;;  %v1084_v46 = vld [vmem:[%s1939_s2] ss:$0 sm:$0xff]  ;;  %v1408_v11 = vld [vmem:[#allocation8 + $0x30] sm:$0xff]  }
  0x96   : > { %1223 = vmatpush3.bf16.msra.mxu1 %v1374_v12  ;;  %v1409_v12 = vld [vmem:[#allocation8 + $0x38] sm:$0xff]   ;;  %p1527_p7 = pneg %p1526_p3 }
  0x97   : > { %1224 = vmatprep.subr.bf16.mxu1 %v1377_v14 }
  0x98   : > { %1167 = vmatpush3.bf16.msra.mxu0 %v1375_v13  ;;  %v1115_v13 = vld [vmem:[%s1941_s4] ss:$0 sm:$0xff]  ;;  %p1534_p4 = pnand %p1533_p2, %p1527_p7 }
  0x99   : > { %1168 = vmatprep.subr.bf16.mxu0 %v1376_v15 }
  0x9a   : > { %1225 = vmatpush3.bf16.msra.mxu1 %v1377_v14 }
  0x9b   : > { %1226 = vmatprep.subr.bf16.mxu1 %v1380_v17 }
  0x9c   : > { %1169 = vmatpush3.bf16.msra.mxu0 %v1378_v16 }
  0x9d   : > { %1170 = vmatprep.subr.bf16.mxu0 %v1379_v18 }
  0x9e   : > { %1227 = vmatpush3.bf16.msra.mxu1 %v1380_v17 }
  0x9f   : > { %1228 = vmatprep.subr.bf16.mxu1 %v1383_v21 }
  0xa0   : > { %1171 = vmatpush3.bf16.msra.mxu0 %v1381_v19 }
  0xa1   : > { %1172 = vmatprep.subr.bf16.mxu0 %v1382_v20 }
  0xa2   : > { %1229 = vmatpush3.bf16.msra.mxu1 %v1383_v21 }
  0xa3   : > { %1230 = vmatprep.subr.bf16.mxu1 %v1388_v25 }
  0xa4   : > { %1173 = vmatpush3.bf16.msra.mxu0 %v1384_v23 }
  0xa5   : > { %1236 = vmatprep.subr.bf16.mxu0 %v1394_v27 }
  0xa6   : > { %1231 = vmatpush3.bf16.msra.mxu1 %v1388_v25 }
  0xa7   : > { %617 = vmatmul.mubr.bf16.vlgmr.msra.gmra.mrb[0].mxu0 %v1385_v26  ;;  %1256 = vmatprep.subr.bf16.mxu1 %v1402_v38 }
  0xa8   : > { %624 = vmatprep.mubr.bf16.mxu0 %v1391_v28  ;;  %1237 = vmatpush3.bf16.msra.mxu0 %v1394_v27 }
  0xa9   : > { %1238 = vmatprep.subr.bf16.mxu0 %v1395_v30  ;;  %1233 = vmatmul.mubr.bf16.vlgmr.msra.gmra.mrb[0].mxu1 %v1390_v29  ;;  %v1124_v29 = vld [vmem:[%s1943_s6] ss:$0 sm:$0xff] }
  0xaa   : > { %1257 = vmatpush3.bf16.msra.mxu1 %v1402_v38 }
  0xab   : > { %1258 = vmatprep.subr.bf16.mxu1 %v1403_v39 }
  0xac   : > { %1239 = vmatpush3.bf16.msra.mxu0 %v1395_v30 }
  0xad   : > { %1240 = vmatprep.subr.bf16.mxu0 %v1396_v31 }
  0xae   : > { %1259 = vmatpush3.bf16.msra.mxu1 %v1403_v39 }
  0xaf   : > { %625 = vmatmul.mubr.bf16.gmra.mrb[4].mxu0 %v1393_v32  ;;  %1260 = vmatprep.subr.bf16.mxu1 %v1404_v40 }
  0xb0   : > { %1241 = vmatpush3.bf16.msra.mxu0 %v1396_v31 }
  0xb1   : > { %1242 = vmatprep.subr.bf16.mxu0 %v1397_v33 }
  0xb2   : > { %1261 = vmatpush3.bf16.msra.mxu1 %v1404_v40 }
  0xb3   : > { %1262 = vmatprep.subr.bf16.mxu1 %v1405_v41 }
  0xb4   : > { %1243 = vmatpush3.bf16.msra.mxu0 %v1397_v33 }
  0xb5   : > { %1244 = vmatprep.subr.bf16.mxu0 %v1398_v34 }
  0xb6   : > { %1263 = vmatpush3.bf16.msra.mxu1 %v1405_v41 }
  0xb7   : > { %1264 = vmatprep.subr.bf16.mxu1 %v1406_v42 }
  0xb8   : > { %1245 = vmatpush3.bf16.msra.mxu0 %v1398_v34 }
  0xb9   : > { %1246 = vmatprep.subr.bf16.mxu0 %v1399_v35 }
  0xba   : > { %1265 = vmatpush3.bf16.msra.mxu1 %v1406_v42 }
  0xbb   : > { %1266 = vmatprep.subr.bf16.mxu1 %v1407_v43 }
  0xbc   : > { %1247 = vmatpush3.bf16.msra.mxu0 %v1399_v35 }
  0xbd   : > { %1248 = vmatprep.subr.bf16.mxu0 %v1400_v36 }
  0xbe   : > { %1267 = vmatpush3.bf16.msra.mxu1 %v1407_v43 }
  0xbf   : > { %1268 = vmatprep.subr.bf16.mxu1 %v1408_v11 }
  0xc0   : > { %1249 = vmatpush3.bf16.msra.mxu0 %v1400_v36 }
  0xc1   : > { %1250 = vmatprep.subr.bf16.mxu0 %v1401_v37 }
  0xc2   : > { %1269 = vmatpush3.bf16.msra.mxu1 %v1408_v11 }
  0xc3   : > { %1270 = vmatprep.subr.bf16.mxu1 %v1409_v12 }
  0xc4   : > { %1251 = vmatpush3.bf16.msra.mxu0 %v1401_v37 }
  0xc6   : > { %1271 = vmatpush3.bf16.msra.mxu1 %v1409_v12 }
 0x17a   : > { %v1174_v44 = vpop.f32.mrb[0].mxu0 }
 0x17b   : > { %v1175_v45 = vpop.f32.mrb[1].mxu0 }
 0x17c   : > { %v1176_v47 = vadd.f32 %v1175_v45, %v1174_v44  ;;  %v1177_v48 = vpop.f32.mrb[2].mxu0  ;;  %v1234_v50 = vpop.f32.mrb[0].mxu1 }
 0x17d   : > { %v1178_v49 = vpop.f32.mrb[3].mxu0  ;;  %v667_v53 = vpop.f32.mrb[1].mxu1 }
 0x17e   : > { %v1179_v51 = vadd.f32 %v1178_v49, %v1177_v48  ;;  %v619_v52 = vadd.f32 %v1176_v47, %v1084_v46  ;;  %v1235_v54 = vpop.f32.mrb[2].mxu1 }
 0x17f   : > { %v670_v57 = vpop.f32.mrb[3].mxu1 }
 0x180   : > { %v668_v55 = vadd.f32 %v667_v53, %v619_v52  ;;  %v622_v56 = vadd.f32 %v1179_v51, %v1084_v46 }
 0x182   : > { %v671_v58 = vadd.f32 %v670_v57, %v622_v56  ;;  %v1180_v59 = vpop.f32.mrb[4].mxu0  ;;  %v682_v61 = vmax.f32 %v668_v55, 0.0 }
 0x183   : > { %v1181_v60 = vpop.f32.mrb[5].mxu0 }
 0x184   : > { %v683_v62 = vmax.f32 %v671_v58, 0.0  ;;  %v1182_v63 = vadd.f32 %v1181_v60, %v1180_v59  ;;  %v1183_v0 = vpop.f32.mrb[6].mxu0 }
 0x185   : > { %v1184_v1 = vpop.f32.mrb[7].mxu0 }
 0x186   : > { %v686_v2 = vpack.c.bf16 %v683_v62, %v682_v61  ;;  %v627_v3 = vadd.f32 %v1182_v63, %v1084_v46  ;;  %v1185_v4 = vadd.f32 %v1184_v1, %v1183_v0 }
 0x188   : > { %v676_v5 = vadd.f32 %v1234_v50, %v627_v3  ;;  %v630_v6 = vadd.f32 %v1185_v4, %v1084_v46  ;;  %1252 = vmatprep.mubr.bf16.mxu0 %v686_v2 }
 0x18a   : > { %v679_v7 = vadd.f32 %v1235_v54, %v630_v6  ;;  %v684_v8 = vmax.f32 %v676_v5, 0.0 }
 0x18c   : > { %v685_v9 = vmax.f32 %v679_v7, 0.0 }
 0x18e   : > { %v687_v10 = vpack.c.bf16 %v685_v9, %v684_v8 }
 0x190   : > { %1253 = vmatmul.mubr.bf16.vlgmr.msra.gmra.mrb[8].mxu0 %v687_v10 }
 0x263   : > { %v1254_v14 = vpop.f32.mrb[8].mxu0 }
 0x264   : > { %v802_v15 = vadd.f32 %v1254_v14, %v1115_v13  ;;  %v793_v16 = vpop.f32.mrb[9].mxu0 }
 0x265   : > { %v794_v17 = vadd.f32 %v1115_v13, %v793_v16  ;;  %v1255_v18 = vpop.f32.mrb[10].mxu0 }
 0x266   : > { %v805_v19 = vadd.f32 %v1255_v18, %v1115_v13  ;;  %v796_v20 = vpop.f32.mrb[11].mxu0  ;;  %v810_v22 = vmax.f32 %v802_v15, 0.0 }
 0x267   : > { %v797_v21 = vadd.f32 %v1115_v13, %v796_v20  ;;  %v808_v24 = vmax.f32 %v794_v17, 0.0 }
 0x268   : > { %v811_v23 = vmax.f32 %v805_v19, 0.0 }
 0x269   : > { %v809_v25 = vmax.f32 %v797_v21, 0.0 }
 0x26a   : > { %v813_v26 = vpack.c.bf16 %v811_v23, %v810_v22 }
 0x26b   : > { %v812_v27 = vpack.c.bf16 %v809_v25, %v808_v24 }
 0x26d   : > { %1272 = vmatprep.mubr.bf16.mxu1 %v812_v27 }
 0x26e   : > { %1273 = vmatmul.mubr.bf16.vlgmr.msra.gmra.mrb[4].mxu1 %v813_v26 }
 0x341   : > { %v1274_v28 = vpop.f32.mrb[4].mxu1 }
 0x342   : > { %v919_v30 = vpop.f32.mrb[5].mxu1  ;;  %v928_v32 = vadd.f32 %v1274_v28, %v1124_v29 }
 0x343   : > { %v1275_v31 = vpop.f32.mrb[6].mxu1  ;;  %v920_v35 = vadd.f32 %v1124_v29, %v919_v30 }
 0x344   : > { %v931_v33 = vadd.f32 %v1275_v31, %v1124_v29  ;;  %v922_v34 = vpop.f32.mrb[7].mxu1 }
 0x345   : > { %v923_v36 = vadd.f32 %v1124_v29, %v922_v34 }
 0x346   : > { %v1155_v37 = vpack.c.bf16 %v931_v33, %v928_v32 }
 0x347   : > { %v1150_v38 = vpack.c.bf16 %v923_v36, %v920_v35 }
 0x348   : > { %1157 = vst [vmem:[%s341_s10 + $0x8] sm:$0xff] %v1155_v37  }
 0x349   : > { %1151 = vst [vmem:[%s341_s10] sm:$0xff] %v1150_v38  }
 0x34a   : > { %1537 = shalt.err (!%p1534_p4)
}
 0x34b   : > { %s1538_s29 = scalar_lea.hbm %s1893_s15, 256  ;;  %s1542_s16 = scalar_lea.hbm %s1944_s7, 512 }
 0x34c   : > { %p1539_p9 = scmp.ne.s32.totalorder %s1893_s15, %s1538_s29  ;;  %p1543_p8 = scmp.lt.u32.totalorder %s1893_s15, %s1944_s7 }
 0x34d   : > { %p1544_p13 = scmp.lt.u32.totalorder %s1542_s16, %s1538_s29  ;;  %p1546_p10 = scmp.lt.u32.totalorder %s1538_s29, %s1893_s15 }
 0x34e   : > { %p1540_p0 = pnand %p1539_p9, %p1805_p5 }
 0x34f   : > { %p1545_p6 = por %p1544_p13, %p1543_p8 }
 0x350   : > { %p1541_p11 = pneg %p1540_p0 }
 0x351   : > { %p1547_p3 = por %p1546_p10, %p1545_p6 }
 0x353   : > { %p1548_p7 = pnand %p1547_p3, %p1541_p11 }
 0x355   : > { %1551 = shalt.err (!%p1548_p7)
}
 0x356   : > { %s1609_s17 = smov 64   ;;  %s1610_s13 = smov 4  }
 0x357   : > { %1293 = dma.vmem_to_hbm [thread:$0]  (%p1805_p5), %s1888_s12, 256, %s1893_s15, %s955_s28, %s1609_s17, %s1609_s17, %s1610_s13  }
 0x358 PF: > { %s1964_s20 = sld [smem:[#allocation15_spill]]  ;;  %s983_s30 = sand.u32 1, %s1586_s24  }
 0x359   : > { %p1966_p1 = scmp.ge.s32.totalorder %s1598_s27, 2  ;;  %s984_s9 = scalar_lea.sflag [#allocation4], %s983_s30 }
 0x35e   : > { %p1965_p12 = scmp.ne.s32.totalorder %s1964_s20, 0 }
 0x360   : > { %p1310_p2 = pnand %p1966_p1, %p1965_p12 }
 0x362   : > { %1581 = dma.done.wait (!%p1310_p2), %s984_s9, 256  }
 0x363   : > { %1583 = vsyncadd (!%p1310_p2), %s984_s9, 4294967040  ;;  %p22_p4 = scmp.ge.s32.totalorder %s1791_s22, 4   ;;  %s1967_s24 = smov %s1590_s25 }
 0x364   : > { %s1968_s25 = smov %s1594_s26  ;;  %s1969_s26 = smov %s1801_s18 }
 0x365   : > { %s1970_s27 = smov %s1791_s22  ;;  %24 = sbr.rel (!%p22_p4) target bundleno = 7 (0x7), region = 105 }
 0x36c   :  { %989 = vsyncpa [#allocation3], 1 }
 0x36d   :  { %991 = vsyncpa [#allocation3 + $0x1], 1 }
 0x36e   :  { %992 = vsyncpa [#allocation6], 1 }
 0x36f   :  { %993 = vsyncpa [#allocation9], 1 }
 0x370   :  { %994 = vsyncpa [#allocation4], 1 }
 0x371   :  { %996 = vsyncpa [#allocation4 + $0x1], 1 }

</bundles_post_ra>
